<compile_context>
chip_gen: v7x
topology: tpu7x:2x2x1
jax: 0.10.0
libtpu: 0.0.40
codegen_flags: <defaults>
</compile_context>

<pallas_src>
import jax
import jax.numpy as jnp
from jax import lax
from jax.experimental import pallas as pl
from jax.experimental.pallas import tpu as pltpu


def _round_up(x, m):
    return (x + m - 1) // m * m


def _conv_bn_relu_pool_kernel(xe_a, xe_b, xo_a, xo_b, w_ref, b_ref, o_ref,
                              se_ref, so_ref):
    # xe_a/xo_a : (Cin, CH)       main flat slab of even/odd column phase
    # xe_b/xo_b : (Cin, 8*wp)     halo block (only first 2*wp lanes used)
    # w_ref     : (3, 3, Cout, Cin)   BN-folded conv weights (bf16)
    # b_ref     : (Cout, 1)           BN-folded bias (f32)
    # o_ref     : (Cout, TH, Wo)      pooled output tile
    # se_ref/so_ref : (Cin, L) bf16 VMEM scratch, L = CH + 2*wp
    Cout, TH, Wo = o_ref.shape
    Cin, CH = xe_a.shape
    wp = CH // (2 * TH)          # padded phase width (lanes per slab row)
    L = CH + 2 * wp              # slab = 2*TH + 2 rows (incl. halo), flattened

    # Stitch main block + 2 halo rows into one flat slab per phase.
    se_ref[:, :CH] = xe_a[...]
    se_ref[:, CH:] = xe_b[:, :2 * wp]
    so_ref[:, :CH] = xo_a[...]
    so_ref[:, CH:] = xo_b[:, :2 * wp]
    xe = se_ref[...]
    xo = so_ref[...]

    def tap(w2, slab, s):
        # One conv tap = one fat matmul over the whole slab; shift the f32
        # result by the tap's (row, col) offset with a lane roll (XLU).
        t = jnp.dot(w2, slab, preferred_element_type=jnp.float32)
        if s == 0:
            return t
        return pltpu.roll(t, L - s, axis=1)

    acc_e = jnp.zeros((Cout, L), jnp.float32)   # even output columns
    acc_o = jnp.zeros((Cout, L), jnp.float32)   # odd output columns
    for kh in range(3):
        r0 = kh * wp
        acc_e = (acc_e
                 + tap(w_ref[kh, 0], xe, r0)
                 + tap(w_ref[kh, 1], xo, r0)
                 + tap(w_ref[kh, 2], xe, r0 + 1))
        acc_o = (acc_o
                 + tap(w_ref[kh, 0], xo, r0)
                 + tap(w_ref[kh, 1], xe, r0 + 1)
                 + tap(w_ref[kh, 2], xo, r0 + 1))

    bias = b_ref[...]                            # (Cout, 1) broadcasts on lanes
    r_e = jnp.maximum(acc_e + bias, 0.0)
    r_o = jnp.maximum(acc_o + bias, 0.0)

    # 2x2 max-pool: column parity is already split (max of the two phases),
    # row pairs are combined with one more lane roll.
    m = jnp.maximum(r_e, r_o)
    m = jnp.maximum(m, pltpu.roll(m, L - wp, axis=1))

    for ho in range(TH):
        o_ref[:, ho, :] = m[:, 2 * ho * wp:2 * ho * wp + Wo].astype(o_ref.dtype)


def conv2d_bn_relu_maxpool(x, w, b, gamma, beta, mean, var, *, eps=1e-5,
                           tile_out_rows=8):
    """Conv2d(3x3, pad 1) -> BatchNorm2d (inference) -> ReLU -> MaxPool2d(2).

    x: (N, Cin, H, W) NCHW f32; w: (Cout, Cin, 3, 3); b/gamma/beta/mean/var: (Cout,)
    Returns (N, Cout, H//2, W//2) NCHW f32.
    """
    N, Cin, H, W = x.shape
    Cout = w.shape[0]
    assert w.shape == (Cout, Cin, 3, 3)
    assert H % 2 == 0 and W % 2 == 0
    Ho, Wo = H // 2, W // 2
    # TODO(synk): pooled heights not divisible by 4 need edge masking in the
    # row-tiling scheme; not needed for this module's typical shapes.
    assert Ho % 4 == 0

    # Row tile (in pooled-output rows).  Constraints keep every BlockSpec dim a
    # multiple of (8, 128) or equal to the full array extent.
    TH = Ho
    for cand in range(min(tile_out_rows, Ho), 3, -1):
        if Ho % cand == 0 and cand % 4 == 0 and (cand % 8 == 0 or cand == Ho):
            TH = cand
            break
    RT = Ho // TH

    # Polyphase split of the padded input: even / odd columns, each flattened
    # to (N, Cin, rows*wp) so every conv tap is a contiguous lane window.
    wp = _round_up(Wo + 1, 16)       # phase width, padded so blocks are %128
    rows = H + 8                     # 1 top pad + H + 7 bottom pad (halo block)
    xb = x.astype(jnp.bfloat16)
    x_pad = jnp.pad(xb, ((0, 0), (0, 0), (1, 7), (1, 2 * wp - W - 1)))
    xe = x_pad[:, :, :, 0::2].reshape(N, Cin, rows * wp)
    xo = x_pad[:, :, :, 1::2].reshape(N, Cin, rows * wp)

    # Fold BatchNorm (inference: running stats) into the conv weights / bias.
    # TODO(synk): training-mode BatchNorm (batch statistics) is not implemented.
    scale = gamma / jnp.sqrt(var + eps)                        # (Cout,)
    w_f = w * scale[:, None, None, None]
    bias_f = (b - mean) * scale + beta
    w_k = jnp.transpose(w_f, (2, 3, 0, 1)).astype(jnp.bfloat16)  # (3,3,Cout,Cin)
    b_k = bias_f.reshape(Cout, 1).astype(jnp.float32)

    CH = 2 * TH * wp                 # flat lanes of the main per-tile block
    HB = 8 * wp                      # flat lanes of the halo block
    L = CH + 2 * wp

    main_spec = pl.BlockSpec((None, Cin, CH), lambda n, t: (n, 0, t))
    halo_spec = pl.BlockSpec((None, Cin, HB),
                             lambda n, t: (n, 0, (TH // 4) * (t + 1)))

    out = pl.pallas_call(
        _conv_bn_relu_pool_kernel,
        out_shape=jax.ShapeDtypeStruct((N, Cout, Ho, Wo), x.dtype),
        grid_spec=pltpu.PrefetchScalarGridSpec(
            num_scalar_prefetch=0,
            grid=(N, RT),
            in_specs=[
                main_spec, halo_spec,                 # even-column phase
                main_spec, halo_spec,                 # odd-column phase
                pl.BlockSpec((3, 3, Cout, Cin), lambda n, t: (0, 0, 0, 0)),
                pl.BlockSpec((Cout, 1), lambda n, t: (0, 0)),
            ],
            out_specs=pl.BlockSpec((None, Cout, TH, Wo),
                                   lambda n, t: (n, 0, t, 0)),
            scratch_shapes=[pltpu.VMEM((Cin, L), jnp.bfloat16),
                            pltpu.VMEM((Cin, L), jnp.bfloat16)],
        ),
        compiler_params=pltpu.CompilerParams(
            dimension_semantics=("parallel", "parallel"),
            vmem_limit_bytes=48 * 1024 * 1024,
        ),
    )(xe, xe, xo, xo, w_k, b_k)
    return out


def _reference(x, w, b, gamma, beta, mean, var, eps=1e-5):
    y = lax.conv_general_dilated(
        x, w, window_strides=(1, 1), padding=((1, 1), (1, 1)),
        dimension_numbers=("NCHW", "OIHW", "NCHW"))
    y = y + b.reshape(1, -1, 1, 1)
    scale = (gamma / jnp.sqrt(var + eps)).reshape(1, -1, 1, 1)
    y = (y - mean.reshape(1, -1, 1, 1)) * scale + beta.reshape(1, -1, 1, 1)
    y = jnp.maximum(y, 0.0)
    return lax.reduce_window(y, -jnp.inf, lax.max,
                             (1, 1, 2, 2), (1, 1, 2, 2), "VALID")


if __name__ == "__main__":
    key = jax.random.PRNGKey(0)
    N, Cin, Cout, H, W = 2, 4, 8, 32, 32
    ks = jax.random.split(key, 7)
    x = jax.random.normal(ks[0], (N, Cin, H, W), jnp.float32)
    w = jax.random.normal(ks[1], (Cout, Cin, 3, 3), jnp.float32) / (Cin * 9) ** 0.5
    b = 0.1 * jax.random.normal(ks[2], (Cout,), jnp.float32)
    gamma = 1.0 + 0.2 * jax.random.normal(ks[3], (Cout,), jnp.float32)
    beta = 0.1 * jax.random.normal(ks[4], (Cout,), jnp.float32)
    mean = 0.1 * jax.random.normal(ks[5], (Cout,), jnp.float32)
    var = 0.5 + jax.random.uniform(ks[6], (Cout,), jnp.float32)

    fn = jax.jit(conv2d_bn_relu_maxpool)
    y = fn(x, w, b, gamma, beta, mean, var)
    y = jax.block_until_ready(y)

    ref = _reference(x, w, b, gamma, beta, mean, var)
    assert y.shape == ref.shape == (N, Cout, H // 2, W // 2)
    err = float(jnp.max(jnp.abs(y - ref)))
    assert err < 5e-2, f"max abs err {err}"
    print("KERNEL_OK")
</pallas_src>

<mosaic_0001>
module attributes {stable_mosaic.version = 11 : i64} {
  func.func @_conv_bn_relu_pool_kernel(%arg0: i32, %arg1: i32, %arg2: memref<1x4x512xbf16, #tpu.memory_space<vmem>>, %arg3: memref<1x4x256xbf16, #tpu.memory_space<vmem>>, %arg4: memref<1x4x512xbf16, #tpu.memory_space<vmem>>, %arg5: memref<1x4x256xbf16, #tpu.memory_space<vmem>>, %arg6: memref<3x3x8x4xbf16, #tpu.memory_space<vmem>>, %arg7: memref<8x1xf32, #tpu.memory_space<vmem>>, %arg8: memref<1x8x8x16xf32, #tpu.memory_space<vmem>>, %arg9: memref<4x576xbf16, #tpu.memory_space<vmem>>, %arg10: memref<4x576xbf16, #tpu.memory_space<vmem>>) attributes {dimension_semantics = [#tpu.dimension_semantics<parallel>, #tpu.dimension_semantics<parallel>], iteration_bounds = array<i64: 2, 2>, scalar_prefetch = 0 : i64, scratch_operands = 2 : i64, tpu.core_type = #tpu.core_type<tc>, window_params = [{transform_indices = @transform_0, window_bounds = array<i64: 1, 4, 512>}, {transform_indices = @transform_1, window_bounds = array<i64: 1, 4, 256>}, {transform_indices = @transform_2, window_bounds = array<i64: 1, 4, 512>}, {transform_indices = @transform_3, window_bounds = array<i64: 1, 4, 256>}, {pipeline_mode = #tpu.pipeline_mode<synchronous>, transform_indices = @transform_4, window_bounds = array<i64: 3, 3, 8, 4>}, {pipeline_mode = #tpu.pipeline_mode<synchronous>, transform_indices = @transform_5, window_bounds = array<i64: 8, 1>}, {transform_indices = @transform_6, window_bounds = array<i64: 1, 8, 8, 16>}]} {
    %c0 = arith.constant 0 : index
    %c0_0 = arith.constant 0 : index
    %c0_1 = arith.constant 0 : index
    %0 = vector.load %arg2[%c0, %c0_0, %c0_1] : memref<1x4x512xbf16, #tpu.memory_space<vmem>>, vector<1x4x512xbf16>
    %1 = vector.shape_cast %0 : vector<1x4x512xbf16> to vector<4x512xbf16>
    %c0_2 = arith.constant 0 : index
    %c0_3 = arith.constant 0 : index
    %2 = vector.load %arg9[%c0_2, %c0_3] : memref<4x576xbf16, #tpu.memory_space<vmem>>, vector<4x512xbf16>
    tpu.vector_store %arg9[%c0_2, %c0_3], %1 {strides = array<i32>} : memref<4x576xbf16, #tpu.memory_space<vmem>>, vector<4x512xbf16>,
    %c0_4 = arith.constant 0 : index
    %c0_5 = arith.constant 0 : index
    %c0_6 = arith.constant 0 : index
    %3 = vector.load %arg3[%c0_4, %c0_5, %c0_6] : memref<1x4x256xbf16, #tpu.memory_space<vmem>>, vector<1x4x64xbf16>
    %4 = vector.shape_cast %3 : vector<1x4x64xbf16> to vector<4x64xbf16>
    %c0_7 = arith.constant 0 : index
    %c512 = arith.constant 512 : index
    %5 = vector.load %arg9[%c0_7, %c512] : memref<4x576xbf16, #tpu.memory_space<vmem>>, vector<4x64xbf16>
    tpu.vector_store %arg9[%c0_7, %c512], %4 {strides = array<i32>} : memref<4x576xbf16, #tpu.memory_space<vmem>>, vector<4x64xbf16>,
    %c0_8 = arith.constant 0 : index
    %c0_9 = arith.constant 0 : index
    %c0_10 = arith.constant 0 : index
    %6 = vector.load %arg4[%c0_8, %c0_9, %c0_10] : memref<1x4x512xbf16, #tpu.memory_space<vmem>>, vector<1x4x512xbf16>
    %7 = vector.shape_cast %6 : vector<1x4x512xbf16> to vector<4x512xbf16>
    %c0_11 = arith.constant 0 : index
    %c0_12 = arith.constant 0 : index
    %8 = vector.load %arg10[%c0_11, %c0_12] : memref<4x576xbf16, #tpu.memory_space<vmem>>, vector<4x512xbf16>
    tpu.vector_store %arg10[%c0_11, %c0_12], %7 {strides = array<i32>} : memref<4x576xbf16, #tpu.memory_space<vmem>>, vector<4x512xbf16>,
    %c0_13 = arith.constant 0 : index
    %c0_14 = arith.constant 0 : index
    %c0_15 = arith.constant 0 : index
    %9 = vector.load %arg5[%c0_13, %c0_14, %c0_15] : memref<1x4x256xbf16, #tpu.memory_space<vmem>>, vector<1x4x64xbf16>
    %10 = vector.shape_cast %9 : vector<1x4x64xbf16> to vector<4x64xbf16>
    %c0_16 = arith.constant 0 : index
    %c512_17 = arith.constant 512 : index
    %11 = vector.load %arg10[%c0_16, %c512_17] : memref<4x576xbf16, #tpu.memory_space<vmem>>, vector<4x64xbf16>
    tpu.vector_store %arg10[%c0_16, %c512_17], %10 {strides = array<i32>} : memref<4x576xbf16, #tpu.memory_space<vmem>>, vector<4x64xbf16>,
    %c0_18 = arith.constant 0 : index
    %c0_19 = arith.constant 0 : index
    %12 = vector.load %arg9[%c0_18, %c0_19] : memref<4x576xbf16, #tpu.memory_space<vmem>>, vector<4x576xbf16>
    %c0_20 = arith.constant 0 : index
    %c0_21 = arith.constant 0 : index
    %13 = vector.load %arg10[%c0_20, %c0_21] : memref<4x576xbf16, #tpu.memory_space<vmem>>, vector<4x576xbf16>
    %cst = arith.constant 0.000000e+00 : f32
    %14 = vector.broadcast %cst : f32 to vector<8x576xf32>
    %cst_22 = arith.constant 0.000000e+00 : f32
    %15 = vector.broadcast %cst_22 : f32 to vector<8x576xf32>
    %c0_23 = arith.constant 0 : index
    %c0_24 = arith.constant 0 : index
    %c0_25 = arith.constant 0 : index
    %c0_26 = arith.constant 0 : index
    %16 = vector.load %arg6[%c0_23, %c0_24, %c0_25, %c0_26] : memref<3x3x8x4xbf16, #tpu.memory_space<vmem>>, vector<1x1x8x4xbf16>
    %17 = vector.shape_cast %16 : vector<1x1x8x4xbf16> to vector<8x4xbf16>
    %cst_27 = arith.constant dense<0.000000e+00> : vector<8x576xf32>
    %18 = tpu.matmul %17, %12, %cst_27 {dimension_numbers = #tpu.dot_dimension_numbers<[1], [0], [0], [1], [0, 0, 1, 1], [], []>} : vector<8x4xbf16>, vector<4x576xbf16>, vector<8x576xf32> -> vector<8x576xf32>
    %19 = arith.addf %14, %18 : vector<8x576xf32>
    %c0_28 = arith.constant 0 : index
    %c1 = arith.constant 1 : index
    %c0_29 = arith.constant 0 : index
    %c0_30 = arith.constant 0 : index
    %20 = vector.load %arg6[%c0_28, %c1, %c0_29, %c0_30] : memref<3x3x8x4xbf16, #tpu.memory_space<vmem>>, vector<1x1x8x4xbf16>
    %21 = vector.shape_cast %20 : vector<1x1x8x4xbf16> to vector<8x4xbf16>
    %cst_31 = arith.constant dense<0.000000e+00> : vector<8x576xf32>
    %22 = tpu.matmul %21, %13, %cst_31 {dimension_numbers = #tpu.dot_dimension_numbers<[1], [0], [0], [1], [0, 0, 1, 1], [], []>} : vector<8x4xbf16>, vector<4x576xbf16>, vector<8x576xf32> -> vector<8x576xf32>
    %23 = arith.addf %19, %22 : vector<8x576xf32>
    %c0_32 = arith.constant 0 : index
    %c2 = arith.constant 2 : index
    %c0_33 = arith.constant 0 : index
    %c0_34 = arith.constant 0 : index
    %24 = vector.load %arg6[%c0_32, %c2, %c0_33, %c0_34] : memref<3x3x8x4xbf16, #tpu.memory_space<vmem>>, vector<1x1x8x4xbf16>
    %25 = vector.shape_cast %24 : vector<1x1x8x4xbf16> to vector<8x4xbf16>
    %cst_35 = arith.constant dense<0.000000e+00> : vector<8x576xf32>
    %26 = tpu.matmul %25, %12, %cst_35 {dimension_numbers = #tpu.dot_dimension_numbers<[1], [0], [0], [1], [0, 0, 1, 1], [], []>} : vector<8x4xbf16>, vector<4x576xbf16>, vector<8x576xf32> -> vector<8x576xf32>
    %c575_i32 = arith.constant 575 : i32
    %27 = tpu.dynamic_rotate %26 by %c575_i32 dim 1 : vector<8x576xf32>, i32 -> vector<8x576xf32>
    %28 = arith.addf %23, %27 : vector<8x576xf32>
    %c0_36 = arith.constant 0 : index
    %c0_37 = arith.constant 0 : index
    %c0_38 = arith.constant 0 : index
    %c0_39 = arith.constant 0 : index
    %29 = vector.load %arg6[%c0_36, %c0_37, %c0_38, %c0_39] : memref<3x3x8x4xbf16, #tpu.memory_space<vmem>>, vector<1x1x8x4xbf16>
    %30 = vector.shape_cast %29 : vector<1x1x8x4xbf16> to vector<8x4xbf16>
    %cst_40 = arith.constant dense<0.000000e+00> : vector<8x576xf32>
    %31 = tpu.matmul %30, %13, %cst_40 {dimension_numbers = #tpu.dot_dimension_numbers<[1], [0], [0], [1], [0, 0, 1, 1], [], []>} : vector<8x4xbf16>, vector<4x576xbf16>, vector<8x576xf32> -> vector<8x576xf32>
    %32 = arith.addf %15, %31 : vector<8x576xf32>
    %c0_41 = arith.constant 0 : index
    %c1_42 = arith.constant 1 : index
    %c0_43 = arith.constant 0 : index
    %c0_44 = arith.constant 0 : index
    %33 = vector.load %arg6[%c0_41, %c1_42, %c0_43, %c0_44] : memref<3x3x8x4xbf16, #tpu.memory_space<vmem>>, vector<1x1x8x4xbf16>
    %34 = vector.shape_cast %33 : vector<1x1x8x4xbf16> to vector<8x4xbf16>
    %cst_45 = arith.constant dense<0.000000e+00> : vector<8x576xf32>
    %35 = tpu.matmul %34, %12, %cst_45 {dimension_numbers = #tpu.dot_dimension_numbers<[1], [0], [0], [1], [0, 0, 1, 1], [], []>} : vector<8x4xbf16>, vector<4x576xbf16>, vector<8x576xf32> -> vector<8x576xf32>
    %c575_i32_46 = arith.constant 575 : i32
    %36 = tpu.dynamic_rotate %35 by %c575_i32_46 dim 1 : vector<8x576xf32>, i32 -> vector<8x576xf32>
    %37 = arith.addf %32, %36 : vector<8x576xf32>
    %c0_47 = arith.constant 0 : index
    %c2_48 = arith.constant 2 : index
    %c0_49 = arith.constant 0 : index
    %c0_50 = arith.constant 0 : index
    %38 = vector.load %arg6[%c0_47, %c2_48, %c0_49, %c0_50] : memref<3x3x8x4xbf16, #tpu.memory_space<vmem>>, vector<1x1x8x4xbf16>
    %39 = vector.shape_cast %38 : vector<1x1x8x4xbf16> to vector<8x4xbf16>
    %cst_51 = arith.constant dense<0.000000e+00> : vector<8x576xf32>
    %40 = tpu.matmul %39, %13, %cst_51 {dimension_numbers = #tpu.dot_dimension_numbers<[1], [0], [0], [1], [0, 0, 1, 1], [], []>} : vector<8x4xbf16>, vector<4x576xbf16>, vector<8x576xf32> -> vector<8x576xf32>
    %c575_i32_52 = arith.constant 575 : i32
    %41 = tpu.dynamic_rotate %40 by %c575_i32_52 dim 1 : vector<8x576xf32>, i32 -> vector<8x576xf32>
    %42 = arith.addf %37, %41 : vector<8x576xf32>
    %c1_53 = arith.constant 1 : index
    %c0_54 = arith.constant 0 : index
    %c0_55 = arith.constant 0 : index
    %c0_56 = arith.constant 0 : index
    %43 = vector.load %arg6[%c1_53, %c0_54, %c0_55, %c0_56] : memref<3x3x8x4xbf16, #tpu.memory_space<vmem>>, vector<1x1x8x4xbf16>
    %44 = vector.shape_cast %43 : vector<1x1x8x4xbf16> to vector<8x4xbf16>
    %cst_57 = arith.constant dense<0.000000e+00> : vector<8x576xf32>
    %45 = tpu.matmul %44, %12, %cst_57 {dimension_numbers = #tpu.dot_dimension_numbers<[1], [0], [0], [1], [0, 0, 1, 1], [], []>} : vector<8x4xbf16>, vector<4x576xbf16>, vector<8x576xf32> -> vector<8x576xf32>
    %c544_i32 = arith.constant 544 : i32
    %46 = tpu.dynamic_rotate %45 by %c544_i32 dim 1 : vector<8x576xf32>, i32 -> vector<8x576xf32>
    %47 = arith.addf %28, %46 : vector<8x576xf32>
    %c1_58 = arith.constant 1 : index
    %c1_59 = arith.constant 1 : index
    %c0_60 = arith.constant 0 : index
    %c0_61 = arith.constant 0 : index
    %48 = vector.load %arg6[%c1_58, %c1_59, %c0_60, %c0_61] : memref<3x3x8x4xbf16, #tpu.memory_space<vmem>>, vector<1x1x8x4xbf16>
    %49 = vector.shape_cast %48 : vector<1x1x8x4xbf16> to vector<8x4xbf16>
    %cst_62 = arith.constant dense<0.000000e+00> : vector<8x576xf32>
    %50 = tpu.matmul %49, %13, %cst_62 {dimension_numbers = #tpu.dot_dimension_numbers<[1], [0], [0], [1], [0, 0, 1, 1], [], []>} : vector<8x4xbf16>, vector<4x576xbf16>, vector<8x576xf32> -> vector<8x576xf32>
    %c544_i32_63 = arith.constant 544 : i32
    %51 = tpu.dynamic_rotate %50 by %c544_i32_63 dim 1 : vector<8x576xf32>, i32 -> vector<8x576xf32>
    %52 = arith.addf %47, %51 : vector<8x576xf32>
    %c1_64 = arith.constant 1 : index
    %c2_65 = arith.constant 2 : index
    %c0_66 = arith.constant 0 : index
    %c0_67 = arith.constant 0 : index
    %53 = vector.load %arg6[%c1_64, %c2_65, %c0_66, %c0_67] : memref<3x3x8x4xbf16, #tpu.memory_space<vmem>>, vector<1x1x8x4xbf16>
    %54 = vector.shape_cast %53 : vector<1x1x8x4xbf16> to vector<8x4xbf16>
    %cst_68 = arith.constant dense<0.000000e+00> : vector<8x576xf32>
    %55 = tpu.matmul %54, %12, %cst_68 {dimension_numbers = #tpu.dot_dimension_numbers<[1], [0], [0], [1], [0, 0, 1, 1], [], []>} : vector<8x4xbf16>, vector<4x576xbf16>, vector<8x576xf32> -> vector<8x576xf32>
    %c543_i32 = arith.constant 543 : i32
    %56 = tpu.dynamic_rotate %55 by %c543_i32 dim 1 : vector<8x576xf32>, i32 -> vector<8x576xf32>
    %57 = arith.addf %52, %56 : vector<8x576xf32>
    %c1_69 = arith.constant 1 : index
    %c0_70 = arith.constant 0 : index
    %c0_71 = arith.constant 0 : index
    %c0_72 = arith.constant 0 : index
    %58 = vector.load %arg6[%c1_69, %c0_70, %c0_71, %c0_72] : memref<3x3x8x4xbf16, #tpu.memory_space<vmem>>, vector<1x1x8x4xbf16>
    %59 = vector.shape_cast %58 : vector<1x1x8x4xbf16> to vector<8x4xbf16>
    %cst_73 = arith.constant dense<0.000000e+00> : vector<8x576xf32>
    %60 = tpu.matmul %59, %13, %cst_73 {dimension_numbers = #tpu.dot_dimension_numbers<[1], [0], [0], [1], [0, 0, 1, 1], [], []>} : vector<8x4xbf16>, vector<4x576xbf16>, vector<8x576xf32> -> vector<8x576xf32>
    %c544_i32_74 = arith.constant 544 : i32
    %61 = tpu.dynamic_rotate %60 by %c544_i32_74 dim 1 : vector<8x576xf32>, i32 -> vector<8x576xf32>
    %62 = arith.addf %42, %61 : vector<8x576xf32>
    %c1_75 = arith.constant 1 : index
    %c1_76 = arith.constant 1 : index
    %c0_77 = arith.constant 0 : index
    %c0_78 = arith.constant 0 : index
    %63 = vector.load %arg6[%c1_75, %c1_76, %c0_77, %c0_78] : memref<3x3x8x4xbf16, #tpu.memory_space<vmem>>, vector<1x1x8x4xbf16>
    %64 = vector.shape_cast %63 : vector<1x1x8x4xbf16> to vector<8x4xbf16>
    %cst_79 = arith.constant dense<0.000000e+00> : vector<8x576xf32>
    %65 = tpu.matmul %64, %12, %cst_79 {dimension_numbers = #tpu.dot_dimension_numbers<[1], [0], [0], [1], [0, 0, 1, 1], [], []>} : vector<8x4xbf16>, vector<4x576xbf16>, vector<8x576xf32> -> vector<8x576xf32>
    %c543_i32_80 = arith.constant 543 : i32
    %66 = tpu.dynamic_rotate %65 by %c543_i32_80 dim 1 : vector<8x576xf32>, i32 -> vector<8x576xf32>
    %67 = arith.addf %62, %66 : vector<8x576xf32>
    %c1_81 = arith.constant 1 : index
    %c2_82 = arith.constant 2 : index
    %c0_83 = arith.constant 0 : index
    %c0_84 = arith.constant 0 : index
    %68 = vector.load %arg6[%c1_81, %c2_82, %c0_83, %c0_84] : memref<3x3x8x4xbf16, #tpu.memory_space<vmem>>, vector<1x1x8x4xbf16>
    %69 = vector.shape_cast %68 : vector<1x1x8x4xbf16> to vector<8x4xbf16>
    %cst_85 = arith.constant dense<0.000000e+00> : vector<8x576xf32>
    %70 = tpu.matmul %69, %13, %cst_85 {dimension_numbers = #tpu.dot_dimension_numbers<[1], [0], [0], [1], [0, 0, 1, 1], [], []>} : vector<8x4xbf16>, vector<4x576xbf16>, vector<8x576xf32> -> vector<8x576xf32>
    %c543_i32_86 = arith.constant 543 : i32
    %71 = tpu.dynamic_rotate %70 by %c543_i32_86 dim 1 : vector<8x576xf32>, i32 -> vector<8x576xf32>
    %72 = arith.addf %67, %71 : vector<8x576xf32>
    %c2_87 = arith.constant 2 : index
    %c0_88 = arith.constant 0 : index
    %c0_89 = arith.constant 0 : index
    %c0_90 = arith.constant 0 : index
    %73 = vector.load %arg6[%c2_87, %c0_88, %c0_89, %c0_90] : memref<3x3x8x4xbf16, #tpu.memory_space<vmem>>, vector<1x1x8x4xbf16>
    %74 = vector.shape_cast %73 : vector<1x1x8x4xbf16> to vector<8x4xbf16>
    %cst_91 = arith.constant dense<0.000000e+00> : vector<8x576xf32>
    %75 = tpu.matmul %74, %12, %cst_91 {dimension_numbers = #tpu.dot_dimension_numbers<[1], [0], [0], [1], [0, 0, 1, 1], [], []>} : vector<8x4xbf16>, vector<4x576xbf16>, vector<8x576xf32> -> vector<8x576xf32>
    %c512_i32 = arith.constant 512 : i32
    %76 = tpu.dynamic_rotate %75 by %c512_i32 dim 1 : vector<8x576xf32>, i32 -> vector<8x576xf32>
    %77 = arith.addf %57, %76 : vector<8x576xf32>
    %c2_92 = arith.constant 2 : index
    %c1_93 = arith.constant 1 : index
    %c0_94 = arith.constant 0 : index
    %c0_95 = arith.constant 0 : index
    %78 = vector.load %arg6[%c2_92, %c1_93, %c0_94, %c0_95] : memref<3x3x8x4xbf16, #tpu.memory_space<vmem>>, vector<1x1x8x4xbf16>
    %79 = vector.shape_cast %78 : vector<1x1x8x4xbf16> to vector<8x4xbf16>
    %cst_96 = arith.constant dense<0.000000e+00> : vector<8x576xf32>
    %80 = tpu.matmul %79, %13, %cst_96 {dimension_numbers = #tpu.dot_dimension_numbers<[1], [0], [0], [1], [0, 0, 1, 1], [], []>} : vector<8x4xbf16>, vector<4x576xbf16>, vector<8x576xf32> -> vector<8x576xf32>
    %c512_i32_97 = arith.constant 512 : i32
    %81 = tpu.dynamic_rotate %80 by %c512_i32_97 dim 1 : vector<8x576xf32>, i32 -> vector<8x576xf32>
    %82 = arith.addf %77, %81 : vector<8x576xf32>
    %c2_98 = arith.constant 2 : index
    %c2_99 = arith.constant 2 : index
    %c0_100 = arith.constant 0 : index
    %c0_101 = arith.constant 0 : index
    %83 = vector.load %arg6[%c2_98, %c2_99, %c0_100, %c0_101] : memref<3x3x8x4xbf16, #tpu.memory_space<vmem>>, vector<1x1x8x4xbf16>
    %84 = vector.shape_cast %83 : vector<1x1x8x4xbf16> to vector<8x4xbf16>
    %cst_102 = arith.constant dense<0.000000e+00> : vector<8x576xf32>
    %85 = tpu.matmul %84, %12, %cst_102 {dimension_numbers = #tpu.dot_dimension_numbers<[1], [0], [0], [1], [0, 0, 1, 1], [], []>} : vector<8x4xbf16>, vector<4x576xbf16>, vector<8x576xf32> -> vector<8x576xf32>
    %c511_i32 = arith.constant 511 : i32
    %86 = tpu.dynamic_rotate %85 by %c511_i32 dim 1 : vector<8x576xf32>, i32 -> vector<8x576xf32>
    %87 = arith.addf %82, %86 : vector<8x576xf32>
    %c2_103 = arith.constant 2 : index
    %c0_104 = arith.constant 0 : index
    %c0_105 = arith.constant 0 : index
    %c0_106 = arith.constant 0 : index
    %88 = vector.load %arg6[%c2_103, %c0_104, %c0_105, %c0_106] : memref<3x3x8x4xbf16, #tpu.memory_space<vmem>>, vector<1x1x8x4xbf16>
    %89 = vector.shape_cast %88 : vector<1x1x8x4xbf16> to vector<8x4xbf16>
    %cst_107 = arith.constant dense<0.000000e+00> : vector<8x576xf32>
    %90 = tpu.matmul %89, %13, %cst_107 {dimension_numbers = #tpu.dot_dimension_numbers<[1], [0], [0], [1], [0, 0, 1, 1], [], []>} : vector<8x4xbf16>, vector<4x576xbf16>, vector<8x576xf32> -> vector<8x576xf32>
    %c512_i32_108 = arith.constant 512 : i32
    %91 = tpu.dynamic_rotate %90 by %c512_i32_108 dim 1 : vector<8x576xf32>, i32 -> vector<8x576xf32>
    %92 = arith.addf %72, %91 : vector<8x576xf32>
    %c2_109 = arith.constant 2 : index
    %c1_110 = arith.constant 1 : index
    %c0_111 = arith.constant 0 : index
    %c0_112 = arith.constant 0 : index
    %93 = vector.load %arg6[%c2_109, %c1_110, %c0_111, %c0_112] : memref<3x3x8x4xbf16, #tpu.memory_space<vmem>>, vector<1x1x8x4xbf16>
    %94 = vector.shape_cast %93 : vector<1x1x8x4xbf16> to vector<8x4xbf16>
    %cst_113 = arith.constant dense<0.000000e+00> : vector<8x576xf32>
    %95 = tpu.matmul %94, %12, %cst_113 {dimension_numbers = #tpu.dot_dimension_numbers<[1], [0], [0], [1], [0, 0, 1, 1], [], []>} : vector<8x4xbf16>, vector<4x576xbf16>, vector<8x576xf32> -> vector<8x576xf32>
    %c511_i32_114 = arith.constant 511 : i32
    %96 = tpu.dynamic_rotate %95 by %c511_i32_114 dim 1 : vector<8x576xf32>, i32 -> vector<8x576xf32>
    %97 = arith.addf %92, %96 : vector<8x576xf32>
    %c2_115 = arith.constant 2 : index
    %c2_116 = arith.constant 2 : index
    %c0_117 = arith.constant 0 : index
    %c0_118 = arith.constant 0 : index
    %98 = vector.load %arg6[%c2_115, %c2_116, %c0_117, %c0_118] : memref<3x3x8x4xbf16, #tpu.memory_space<vmem>>, vector<1x1x8x4xbf16>
    %99 = vector.shape_cast %98 : vector<1x1x8x4xbf16> to vector<8x4xbf16>
    %cst_119 = arith.constant dense<0.000000e+00> : vector<8x576xf32>
    %100 = tpu.matmul %99, %13, %cst_119 {dimension_numbers = #tpu.dot_dimension_numbers<[1], [0], [0], [1], [0, 0, 1, 1], [], []>} : vector<8x4xbf16>, vector<4x576xbf16>, vector<8x576xf32> -> vector<8x576xf32>
    %c511_i32_120 = arith.constant 511 : i32
    %101 = tpu.dynamic_rotate %100 by %c511_i32_120 dim 1 : vector<8x576xf32>, i32 -> vector<8x576xf32>
    %102 = arith.addf %97, %101 : vector<8x576xf32>
    %c0_121 = arith.constant 0 : index
    %c0_122 = arith.constant 0 : index
    %103 = vector.load %arg7[%c0_121, %c0_122] : memref<8x1xf32, #tpu.memory_space<vmem>>, vector<8x1xf32>
    %104 = vector.broadcast %103 : vector<8x1xf32> to vector<8x576xf32>
    %105 = arith.addf %87, %104 : vector<8x576xf32>
    %cst_123 = arith.constant 0.000000e+00 : f32
    %106 = vector.broadcast %cst_123 : f32 to vector<8x576xf32>
    %107 = arith.maximumf %105, %106 : vector<8x576xf32>
    %108 = vector.broadcast %103 : vector<8x1xf32> to vector<8x576xf32>
    %109 = arith.addf %102, %108 : vector<8x576xf32>
    %cst_124 = arith.constant 0.000000e+00 : f32
    %110 = vector.broadcast %cst_124 : f32 to vector<8x576xf32>
    %111 = arith.maximumf %109, %110 : vector<8x576xf32>
    %112 = arith.maximumf %107, %111 : vector<8x576xf32>
    %c544_i32_125 = arith.constant 544 : i32
    %113 = tpu.dynamic_rotate %112 by %c544_i32_125 dim 1 : vector<8x576xf32>, i32 -> vector<8x576xf32>
    %114 = arith.maximumf %112, %113 : vector<8x576xf32>
    %115 = vector.extract_strided_slice %114 {offsets = [0, 0], sizes = [8, 16], strides = [1, 1]} : vector<8x576xf32> to vector<8x16xf32>
    %c0_126 = arith.constant 0 : index
    %c0_127 = arith.constant 0 : index
    %c0_128 = arith.constant 0 : index
    %c0_129 = arith.constant 0 : index
    %116 = vector.load %arg8[%c0_126, %c0_127, %c0_128, %c0_129] : memref<1x8x8x16xf32, #tpu.memory_space<vmem>>, vector<1x8x1x16xf32>
    %117 = vector.shape_cast %116 : vector<1x8x1x16xf32> to vector<8x16xf32>
    %118 = vector.shape_cast %115 : vector<8x16xf32> to vector<1x8x1x16xf32>
    tpu.vector_store %arg8[%c0_126, %c0_127, %c0_128, %c0_129], %118 {strides = array<i32>} : memref<1x8x8x16xf32, #tpu.memory_space<vmem>>, vector<1x8x1x16xf32>,
    %119 = vector.extract_strided_slice %114 {offsets = [0, 64], sizes = [8, 16], strides = [1, 1]} : vector<8x576xf32> to vector<8x16xf32>
    %c0_130 = arith.constant 0 : index
    %c0_131 = arith.constant 0 : index
    %c1_132 = arith.constant 1 : index
    %c0_133 = arith.constant 0 : index
    %120 = vector.load %arg8[%c0_130, %c0_131, %c1_132, %c0_133] : memref<1x8x8x16xf32, #tpu.memory_space<vmem>>, vector<1x8x1x16xf32>
    %121 = vector.shape_cast %120 : vector<1x8x1x16xf32> to vector<8x16xf32>
    %122 = vector.shape_cast %119 : vector<8x16xf32> to vector<1x8x1x16xf32>
    tpu.vector_store %arg8[%c0_130, %c0_131, %c1_132, %c0_133], %122 {strides = array<i32>} : memref<1x8x8x16xf32, #tpu.memory_space<vmem>>, vector<1x8x1x16xf32>,
    %123 = vector.extract_strided_slice %114 {offsets = [0, 128], sizes = [8, 16], strides = [1, 1]} : vector<8x576xf32> to vector<8x16xf32>
    %c0_134 = arith.constant 0 : index
    %c0_135 = arith.constant 0 : index
    %c2_136 = arith.constant 2 : index
    %c0_137 = arith.constant 0 : index
    %124 = vector.load %arg8[%c0_134, %c0_135, %c2_136, %c0_137] : memref<1x8x8x16xf32, #tpu.memory_space<vmem>>, vector<1x8x1x16xf32>
    %125 = vector.shape_cast %124 : vector<1x8x1x16xf32> to vector<8x16xf32>
    %126 = vector.shape_cast %123 : vector<8x16xf32> to vector<1x8x1x16xf32>
    tpu.vector_store %arg8[%c0_134, %c0_135, %c2_136, %c0_137], %126 {strides = array<i32>} : memref<1x8x8x16xf32, #tpu.memory_space<vmem>>, vector<1x8x1x16xf32>,
    %127 = vector.extract_strided_slice %114 {offsets = [0, 192], sizes = [8, 16], strides = [1, 1]} : vector<8x576xf32> to vector<8x16xf32>
    %c0_138 = arith.constant 0 : index
    %c0_139 = arith.constant 0 : index
    %c3 = arith.constant 3 : index
    %c0_140 = arith.constant 0 : index
    %128 = vector.load %arg8[%c0_138, %c0_139, %c3, %c0_140] : memref<1x8x8x16xf32, #tpu.memory_space<vmem>>, vector<1x8x1x16xf32>
    %129 = vector.shape_cast %128 : vector<1x8x1x16xf32> to vector<8x16xf32>
    %130 = vector.shape_cast %127 : vector<8x16xf32> to vector<1x8x1x16xf32>
    tpu.vector_store %arg8[%c0_138, %c0_139, %c3, %c0_140], %130 {strides = array<i32>} : memref<1x8x8x16xf32, #tpu.memory_space<vmem>>, vector<1x8x1x16xf32>,
    %131 = vector.extract_strided_slice %114 {offsets = [0, 256], sizes = [8, 16], strides = [1, 1]} : vector<8x576xf32> to vector<8x16xf32>
    %c0_141 = arith.constant 0 : index
    %c0_142 = arith.constant 0 : index
    %c4 = arith.constant 4 : index
    %c0_143 = arith.constant 0 : index
    %132 = vector.load %arg8[%c0_141, %c0_142, %c4, %c0_143] : memref<1x8x8x16xf32, #tpu.memory_space<vmem>>, vector<1x8x1x16xf32>
    %133 = vector.shape_cast %132 : vector<1x8x1x16xf32> to vector<8x16xf32>
    %134 = vector.shape_cast %131 : vector<8x16xf32> to vector<1x8x1x16xf32>
    tpu.vector_store %arg8[%c0_141, %c0_142, %c4, %c0_143], %134 {strides = array<i32>} : memref<1x8x8x16xf32, #tpu.memory_space<vmem>>, vector<1x8x1x16xf32>,
    %135 = vector.extract_strided_slice %114 {offsets = [0, 320], sizes = [8, 16], strides = [1, 1]} : vector<8x576xf32> to vector<8x16xf32>
    %c0_144 = arith.constant 0 : index
    %c0_145 = arith.constant 0 : index
    %c5 = arith.constant 5 : index
    %c0_146 = arith.constant 0 : index
    %136 = vector.load %arg8[%c0_144, %c0_145, %c5, %c0_146] : memref<1x8x8x16xf32, #tpu.memory_space<vmem>>, vector<1x8x1x16xf32>
    %137 = vector.shape_cast %136 : vector<1x8x1x16xf32> to vector<8x16xf32>
    %138 = vector.shape_cast %135 : vector<8x16xf32> to vector<1x8x1x16xf32>
    tpu.vector_store %arg8[%c0_144, %c0_145, %c5, %c0_146], %138 {strides = array<i32>} : memref<1x8x8x16xf32, #tpu.memory_space<vmem>>, vector<1x8x1x16xf32>,
    %139 = vector.extract_strided_slice %114 {offsets = [0, 384], sizes = [8, 16], strides = [1, 1]} : vector<8x576xf32> to vector<8x16xf32>
    %c0_147 = arith.constant 0 : index
    %c0_148 = arith.constant 0 : index
    %c6 = arith.constant 6 : index
    %c0_149 = arith.constant 0 : index
    %140 = vector.load %arg8[%c0_147, %c0_148, %c6, %c0_149] : memref<1x8x8x16xf32, #tpu.memory_space<vmem>>, vector<1x8x1x16xf32>
    %141 = vector.shape_cast %140 : vector<1x8x1x16xf32> to vector<8x16xf32>
    %142 = vector.shape_cast %139 : vector<8x16xf32> to vector<1x8x1x16xf32>
    tpu.vector_store %arg8[%c0_147, %c0_148, %c6, %c0_149], %142 {strides = array<i32>} : memref<1x8x8x16xf32, #tpu.memory_space<vmem>>, vector<1x8x1x16xf32>,
    %143 = vector.extract_strided_slice %114 {offsets = [0, 448], sizes = [8, 16], strides = [1, 1]} : vector<8x576xf32> to vector<8x16xf32>
    %c0_150 = arith.constant 0 : index
    %c0_151 = arith.constant 0 : index
    %c7 = arith.constant 7 : index
    %c0_152 = arith.constant 0 : index
    %144 = vector.load %arg8[%c0_150, %c0_151, %c7, %c0_152] : memref<1x8x8x16xf32, #tpu.memory_space<vmem>>, vector<1x8x1x16xf32>
    %145 = vector.shape_cast %144 : vector<1x8x1x16xf32> to vector<8x16xf32>
    %146 = vector.shape_cast %143 : vector<8x16xf32> to vector<1x8x1x16xf32>
    tpu.vector_store %arg8[%c0_150, %c0_151, %c7, %c0_152], %146 {strides = array<i32>} : memref<1x8x8x16xf32, #tpu.memory_space<vmem>>, vector<1x8x1x16xf32>,
    return
  }
  func.func @transform_0(%arg0: i32, %arg1: i32) -> (i32, i32, i32) {
    %c0_i32 = arith.constant 0 : i32
    %c0_i32_0 = arith.constant 0 : i32
    return %arg0, %c0_i32, %arg1 : i32, i32, i32
  }
  func.func @transform_1(%arg0: i32, %arg1: i32) -> (i32, i32, i32) {
    %c1_i32 = arith.constant 1 : i32
    %0 = arith.addi %arg1, %c1_i32 : i32
    %c2_i32 = arith.constant 2 : i32
    %1 = arith.muli %c2_i32, %0 : i32
    %c0_i32 = arith.constant 0 : i32
    %c0_i32_0 = arith.constant 0 : i32
    return %arg0, %c0_i32, %1 : i32, i32, i32
  }
  func.func @transform_2(%arg0: i32, %arg1: i32) -> (i32, i32, i32) {
    %c0_i32 = arith.constant 0 : i32
    %c0_i32_0 = arith.constant 0 : i32
    return %arg0, %c0_i32, %arg1 : i32, i32, i32
  }
  func.func @transform_3(%arg0: i32, %arg1: i32) -> (i32, i32, i32) {
    %c1_i32 = arith.constant 1 : i32
    %0 = arith.addi %arg1, %c1_i32 : i32
    %c2_i32 = arith.constant 2 : i32
    %1 = arith.muli %c2_i32, %0 : i32
    %c0_i32 = arith.constant 0 : i32
    %c0_i32_0 = arith.constant 0 : i32
    return %arg0, %c0_i32, %1 : i32, i32, i32
  }
  func.func @transform_4(%arg0: i32, %arg1: i32) -> (i32, i32, i32, i32) {
    %c0_i32 = arith.constant 0 : i32
    %c0_i32_0 = arith.constant 0 : i32
    %c0_i32_1 = arith.constant 0 : i32
    %c0_i32_2 = arith.constant 0 : i32
    %c0_i32_3 = arith.constant 0 : i32
    return %c0_i32, %c0_i32_0, %c0_i32_1, %c0_i32_2 : i32, i32, i32, i32
  }
  func.func @transform_5(%arg0: i32, %arg1: i32) -> (i32, i32) {
    %c0_i32 = arith.constant 0 : i32
    %c0_i32_0 = arith.constant 0 : i32
    %c0_i32_1 = arith.constant 0 : i32
    return %c0_i32, %c0_i32_0 : i32, i32
  }
  func.func @transform_6(%arg0: i32, %arg1: i32) -> (i32, i32, i32, i32) {
    %c0_i32 = arith.constant 0 : i32
    %c0_i32_0 = arith.constant 0 : i32
    %c0_i32_1 = arith.constant 0 : i32
    return %arg0, %c0_i32, %arg1, %c0_i32_0 : i32, i32, i32, i32
  }
}

</mosaic_0001>

<bundles_post_ra>
// kernel: conv2d_bn_relu_maxpool.1
= control target key start
LH: loop header
LB: loop body
LE: loop exit
PB: predicated region body
PF: predicated region fallthrough
CT: control target
= control target key end

     0   :  { %11 = vsyncpa [#allocation5], 0  ;;  %s5843_s0 = inlined_call_operand.vmem [shape: bf16[2,4,1280], index: 0, kind: input, shape index: {}, may-alias: {0,1}]   ;;  %s5844_s1 = inlined_call_operand.vmem [shape: bf16[2,4,1280], index: 1, kind: input, shape index: {}, may-alias: {0,1}]   ;;  %s5845_s2 = inlined_call_operand.vmem [shape: bf16[2,4,1280], index: 2, kind: input, shape index: {}, may-alias: {2,3}]   ;;  %s5846_s3 = inlined_call_operand.vmem [shape: bf16[2,4,1280], index: 3, kind: input, shape index: {}, may-alias: {2,3}]   ;;  %s5847_s4 = inlined_call_operand.vmem [shape: bf16[3,3,8,4], index: 4, kind: input, shape index: {}]   ;;  %s5848_s5 = inlined_call_operand.vmem [shape: f32[8,1], index: 5, kind: input, shape index: {}]   ;;  %s5849_s6 = inlined_call_operand.hbm [shape: f32[2,8,16,16], index: 6, kind: output, shape index: {}]  }
   0x1   :  { %13 = vsyncpa [#allocation5 + $0x1], 0  ;;  %s4548_s21 = smov 0   ;;  %s4550_s22 = smov 0  }
   0x2   :  { %s4552_s23 = smov 0   ;;  %s4554_s24 = smov 0  }
   0x3   :  { %s4556_s25 = smov 0   ;;  %s4558_s26 = smov 0  }
   0x4   :  { %s4560_s27 = smov 0   ;;  %s4562_s28 = smov 0  }
   0x5 LB: > { %s4028_s29 = sadd.s32 4294967295, %s4497_s28   ;;  %s4029_s30 = sadd.s32 4294967294, %s4497_s28   ;;  %s4497_s28 = sphi %s4562_s28, %s19_s28   ;;  %s4493_s27 = sphi %s4560_s27, %s5868_s27   ;;  %s4489_s26 = sphi %s4558_s26, %s5867_s26   ;;  %s4485_s25 = sphi %s4556_s25, %s5866_s25   ;;  %s4481_s24 = sphi %s4554_s24, %s5865_s24   ;;  %s4477_s23 = sphi %s4552_s23, %s5864_s23   ;;  %s4473_s22 = sphi %s4550_s22, %s5863_s22   ;;  %s4469_s21 = sphi %s4548_s21, %s5862_s21  }
   0x6   : > { %s28_s7 = sadd.s32 1, %s4489_s26  ;;  %s31_s8 = sadd.s32 1, %s4493_s27 }
   0x7   : > { %p29_p0 = scmp.ge.s32.totalorder %s28_s7, 2  ;;  %p212_p1 = scmp.ne.s32.totalorder %s4477_s23, %s4473_s22 }
   0x8   : > { %p213_p2 = scmp.eq.s32.totalorder %s4028_s29, 3  ;;  %p218_p5 = scmp.ne.s32.totalorder %s4473_s22, %s4469_s21 }
   0x9   : > { %s5870_s7 = smov (%p29_p0, %s28_s7), 0  ;;  %s5872_s8 = smov (!%p29_p0, %s31_s8), %s4493_s27 }
   0xa   : > { %5854 = sst [smem:[#allocation7_spill]] %s5870_s7  ;;  %s198_s9 = ssub.s32 %s4489_s26, %s5870_s7 }
   0xb   : > { %p4599_p3 = por %p213_p2, %p212_p1  ;;  %p33_p4 = scmp.ge.s32.totalorder %s5872_s8, 2 }
   0xc   : > { %p219_p6 = scmp.eq.s32.totalorder %s4029_s30, 3  ;;  %p4036_p7 = scmp.ge.s32.totalorder %s4497_s28, 1 }
   0xd   : > { %s5874_s8 = smov (%p33_p4, %s5872_s8), 0  ;;  %p319_p9 = scmp.lt.s32.totalorder %s4497_s28, 5 }
   0xe   : > { %5856 = sst [smem:[#allocation8_spill]] %s5874_s8  ;;  %p4608_p8 = por %p219_p6, %p218_p5 }
   0xf   : > { %s197_s12 = ssub.s32 %s4493_s27, %s5874_s8  ;;  %s202_s13 = sadd.s32 1, %s4477_s23 }
  0x10   : > { %s199_s14 = sor.u32 %s198_s9, %s197_s12  ;;  %p320_p10 = pnand %p4036_p7, %p319_p9 }
  0x11   : > { %p200_p11 = scmp.eq.s32.totalorder %s199_s14, 0 }
  0x12   : > { %323 = sbr.rel (%p320_p10) target bundleno = 1021 (0x3fd), region = 44 }
  0x13   : > { %s4617_s15 = scalar_select %p200_p11, %s4477_s23, %s202_s13  }
  0x19   : > { %s4038_s16 = sshll.u32 %s4481_s24, 2  ;;  %p397_p12 = scmp.lt.s32.totalorder %s4485_s25, 1  ;;  %v479_v0 = vlaneseq  ;;  %v4499_v1 = vmov 1983009808   ;;  %v4500_v3 = vmov 0   ;;  %vm503_vm0 = vcmask 1041408  }
  0x1a   : > { %p399_p13 = scmp.lt.s32.totalorder %s4038_s16, 9  ;;  %v477_v2 = vunpack.c.l.s4 %v4499_v1  ;;  %551 = vmatprep.mubr.bf16.mxu0 %v4500_v3  ;;  %592 = vmatprep.mubr.bf16.mxu1 %v4500_v3  ;;  %s4168_s20 = sadd.s32 4, %s4038_s16  ;;  %vm460_vm1 = vcmask 517120   ;;  %v4048_v21 = vld [vmem:[%s5847_s4 + $0x4] sm:$0xf]  ;;  %vm499_vm2 = vcmask 31744  }
  0x1b   : > { %s398_s17 = scalar_select %p397_p12, %s4485_s25, 1  ;;  %v4624_v4 = vshrl.u32 %v479_v0, 7  ;;  %4400 = vset.pattern.permute.xlu1 %v4500_v3  ;;  %4401 = vset.pattern.permute.xlu0 %v4500_v3  ;;  %v4501_v22 = vmov 0.0   ;;  %vm4502_vm3 = vmmov 0   ;;  %v470_v29 = vld [vmem:[%s5847_s4] sm:$0xf] }
  0x1c   : > { %s400_s18 = scalar_select %p399_p13, %s4038_s16, 9  ;;  %v478_v5 = vunpack.c.0.s8 %v477_v2  ;;  %v4061_v32 = vld [vmem:[%s5847_s4 + $0x8] sm:$0xf]  ;;  %v4082_v33 = vld [vmem:[%s5847_s4 + $0xc] sm:$0xf]  ;;  %v3296_v35 = vld [vmem:[%s5848_s5] sm:$0xff] }
  0x1d   : > { %5858 = vst [vmem:[#allocation9_spill] sm:$0xff] %v4624_v4  ;;  %s4315_s19 = smul.u32 10, %s398_s17  ;;  %p415_p0 = scmp.lt.s32.totalorder %s4168_s20, 9  ;;  %v4088_v34 = vld [vmem:[%s5847_s4 + $0x10] sm:$0xf]  ;;  %3299 = vperm.xlu1 %4400, %v3296_v35   ;;  %vm934_vm4 = vcmask 1048064  }
  0x1e   : > { %v481_v6 = vsub.s32 %v478_v5, %v4624_v4  ;;  %v4094_v36 = vld [vmem:[%s5847_s4 + $0x14] sm:$0xf]  ;;  %v4115_v37 = vld [vmem:[%s5847_s4 + $0x18] sm:$0xf]  ;;  %v4121_v38 = vld [vmem:[%s5847_s4 + $0x1c] sm:$0xf] }
  0x1f   : > { %s402_s29 = sadd.s32 %s4315_s19, %s400_s18  ;;  %s5876_s20 = smov (!%p415_p0, %s4168_s20), 9  ;;  %v4127_v39 = vld [vmem:[%s5847_s4 + $0x20] sm:$0xf]  ;;  %vm953_vm5 = vcmask 1039360   ;;  %vm1538_vm6 = vcmask 785408   ;;  %vm1857_vm7 = vcmask 777216  }
  0x20   : > { %s4039_s30 = sshll.u32 %s402_s29, 1  ;;  %s418_s16 = sadd.s32 %s4315_s19, %s5876_s20  ;;  %vm2479_vm8 = vcmask 523264   ;;  %vm2804_vm9 = vcmask 515072   ;;  %vm3415_vm10 = vcmask 122880  }
  0x21   : > { %s436_s13 = scalar_lea.vmem %s5845_s2, %s4039_s30  ;;  %s404_s7 = scalar_lea.vmem %s5843_s0, %s4039_s30 }
  0x22   : > { %v462_v7 = vld [vmem:[%s436_s13] sm:$0xff]  ;;  %s4042_s17 = sshll.u32 %s418_s16, 1  ;;  %s4503_s18 = smov 127  }
  0x23   : > { %v457_v8 = vld [vmem:[%s404_s7] sm:$0xff]  ;;  %v482_v9 = vrot.slane %v462_v7, %v481_v6  ;;  %v475_v10 = vcombine.high %v462_v7, %v462_v7  ;;  %s452_s8 = scalar_lea.vmem %s5846_s3, %s4042_s17  ;;  %s420_s9 = scalar_lea.vmem %s5844_s1, %s4042_s17 }
  0x24   : > { %v650_v11 = vrot.slane %v457_v8, %v481_v6  ;;  %v643_v15 = vcombine.high %v457_v8, %v457_v8  ;;  %v464_v19 = vld [vmem:[%s452_s8] sm:$0x3]  ;;  %s4504_s29 = smov 64   ;;  %s4505_s8 = smov 96  }
  0x25   : > { %v4635_v12 = vcombine.high %v482_v9, %v482_v9  ;;  %v4638_v13 = vsel %vm503_vm0, %v482_v9, 0  ;;  %v489_v14 = vrot.slane %v475_v10, %v481_v6  ;;  %v459_v20 = vld [vmem:[%s420_s9] sm:$0x3]  ;;  %465 = vst.msk [vmem:[#allocation3 + $0x8] sm:$0x3] %vm460_vm1, %v464_v19  ;;  %s4506_s30 = smov 95  }
  0x26   : > { %v4653_v18 = vcombine.high %v650_v11, %v650_v11  ;;  %461 = vst.msk [vmem:[#allocation2 + $0x8] sm:$0x3] %vm460_vm1, %v459_v20  ;;  %v657_v23 = vrot.slane %v643_v15, %v481_v6  ;;  %v4667_v24 = vsel %vm503_vm0, %v650_v11, 0  ;;  %s4507_s7 = smov 63   ;;  %s389_s9 = sand.u32 1, %s4473_s22  }
  0x27   : > { %4050 = vmatprep.subr.msk.bf16.mxu0 %vm503_vm0, %v4635_v12  ;;  %v4648_v16 = vcombine.high %v489_v14, %v489_v14  ;;  %v4651_v17 = vsel %vm503_vm0, %v489_v14, 0  ;;  %s4037_s19 = sshll.u32 %s389_s9, 6  ;;  %s4149_s12 = sshll.u32 %s4485_s25, 4 }
  0x28   : > { %520 = vmatpush1.bf16.msra.mxu0 %v4638_v13  ;;  %v4674_v25 = vcombine.high %v657_v23, %v657_v23  ;;  %v4687_v30 = vsel %vm503_vm0, %v657_v23, 0  ;;  %s5496_s20 = scalar_lea.vmem [#allocation4], %s4037_s19  ;;  %s3890_s13 = sadd.s32 %s4481_s24, %s4149_s12 }
  0x29   : > { %4052 = vmatprep.subr.msk.bf16.mxu1 %vm503_vm0, %v4648_v16  ;;  %4207 = vmatprep.subr.bf16.mxu0 %v4501_v22  ;;  %s3893_s14 = sshll.u32 %s5496_s20, 4  ;;  %s4150_s16 = sshll.u32 %s3890_s13, 7  ;;  %s5778_s14 = int_to_ptr.vmem [resolvable:$true] %s3893_s14 }
  0x2a   : > { %561 = vmatpush1.bf16.msra.mxu1 %v4651_v17  ;;  %s5785_s17 = scalar_lea.hbm %s5849_s6, %s4150_s16 }
  0x2b   : > { %4051 = vmatmul.mubr.msk.bf16.vlgmr.msra.gmra.mrb[0].mxu0 %vm499_vm2, %v4048_v21  ;;  %4056 = vmatprep.subr.msk.bf16.mxu1 %vm503_vm0, %v4653_v18 }
  0x2c   : > { %4209 = vmatprep.mubr.msk.bf16.mxu0 %vm4502_vm3, %v4501_v22  ;;  %v4049_v26 = vld.sshfl [vmem:[#allocation3 + $0x8] sm:$0x3 pattern:$0x76325410] }
  0x2d   : > { %4053 = vmatmul.mubr.msk.bf16.vlgmr.msra.gmra.mrb[0].mxu1 %vm499_vm2, %v4048_v21  ;;  %v4678_v27 = vsel %vm503_vm0, %v4049_v26, 0  ;;  %v4055_v28 = vld.sshfl [vmem:[#allocation2 + $0x8] sm:$0x3 pattern:$0x76325410] }
  0x2e   : > { %686 = vmatpush1.bf16.msra.mxu1 %v4667_v24  ;;  %717 = vmatprep.mubr.bf16.mxu1 %v4500_v3  ;;  %v4690_v31 = vsel %vm503_vm0, %v4055_v28, 0 }
  0x2f   : > { %4213 = vmatprep.subr.bf16.mxu1 %v4501_v22  ;;  %4208 = vmatpush3.bf16.msra.mxu0 %v4678_v27 }
  0x30   : > { %4058 = vmatprep.subr.msk.bf16.mxu0 %vm503_vm0, %v4674_v25 }
  0x33   : > { %4210 = vmatmul.mubr.msk.bf16.vlgmr.msra.gmra.mrb[4].mxu0 %vm499_vm2, %v4048_v21 }
  0x34   : > { %727 = vmatpush1.bf16.msra.mxu0 %v4687_v30  ;;  %758 = vmatprep.mubr.bf16.mxu0 %v4500_v3 }
  0x35   : > { %4057 = vmatmul.mubr.msk.bf16.vlgmr.msra.gmra.mrb[4].mxu1 %vm499_vm2, %v470_v29  ;;  %4062 = vmatprep.subr.msk.bf16.mxu0 %vm503_vm0, %v4653_v18 }
  0x36   : > { %4214 = vmatpush3.bf16.msra.mxu1 %v4690_v31  ;;  %4215 = vmatprep.mubr.msk.bf16.mxu1 %vm4502_vm3, %v4501_v22 }
  0x37   : > { %4064 = vmatprep.subr.msk.bf16.mxu1 %vm503_vm0, %v4674_v25 }
  0x3b   : > { %4059 = vmatmul.mubr.msk.bf16.vlgmr.msra.gmra.mrb[8].mxu0 %vm499_vm2, %v470_v29 }
  0x3c   : > { %813 = vmatpush1.bf16.msra.mxu0 %v4667_v24  ;;  %844 = vmatprep.mubr.bf16.mxu0 %v4500_v3 }
  0x3d   : > { %4216 = vmatmul.mubr.msk.bf16.vlgmr.msra.gmra.mrb[8].mxu1 %vm499_vm2, %v470_v29  ;;  %4219 = vmatprep.subr.bf16.mxu0 %v4501_v22 }
  0x3e   : > { %854 = vmatpush1.bf16.msra.mxu1 %v4687_v30  ;;  %885 = vmatprep.mubr.bf16.mxu1 %v4500_v3 }
  0x3f   : > { %4067 = vmatprep.subr.msk.bf16.mxu1 %vm503_vm0, %v4653_v18 }
  0x43   : > { %4063 = vmatmul.mubr.msk.bf16.vlgmr.msra.gmra.mrb[12].mxu0 %vm499_vm2, %v4061_v32 }
  0x44   : > { %4220 = vmatpush3.bf16.msra.mxu0 %v4690_v31  ;;  %4221 = vmatprep.mubr.msk.bf16.mxu0 %vm4502_vm3, %v4501_v22 }
  0x45   : > { %4065 = vmatmul.mubr.msk.bf16.vlgmr.msra.gmra.mrb[12].mxu1 %vm499_vm2, %v4061_v32  ;;  %4069 = vmatprep.subr.msk.bf16.mxu0 %vm503_vm0, %v4674_v25 }
  0x46   : > { %969 = vmatpush1.bf16.msra.mxu1 %v4667_v24  ;;  %1000 = vmatprep.mubr.bf16.mxu1 %v4500_v3 }
  0x47   : > { %4225 = vmatprep.subr.bf16.mxu1 %v4501_v22 }
  0x4b   : > { %4222 = vmatmul.mubr.msk.bf16.vlgmr.msra.gmra.mrb[16].mxu0 %vm499_vm2, %v4061_v32 }
  0x4c   : > { %1010 = vmatpush1.bf16.msra.mxu0 %v4687_v30  ;;  %1041 = vmatprep.mubr.bf16.mxu0 %v4500_v3 }
  0x4d   : > { %4068 = vmatmul.mubr.msk.bf16.vlgmr.msra.gmra.mrb[16].mxu1 %vm499_vm2, %v4048_v21  ;;  %4072 = vmatprep.subr.msk.bf16.mxu0 %vm503_vm0, %v4635_v12 }
  0x4e   : > { %4226 = vmatpush3.bf16.msra.mxu1 %v4690_v31  ;;  %4227 = vmatprep.mubr.msk.bf16.mxu1 %vm4502_vm3, %v4501_v22 }
  0x4f   : > { %4074 = vmatprep.subr.msk.bf16.mxu1 %vm503_vm0, %v4648_v16 }
  0x53   : > { %4070 = vmatmul.mubr.msk.bf16.vlgmr.msra.gmra.mrb[20].mxu0 %vm499_vm2, %v4048_v21 }
  0x54   : > { %1118 = vmatpush1.bf16.msra.mxu0 %v4638_v13  ;;  %1149 = vmatprep.mubr.bf16.mxu0 %v4500_v3 }
  0x55   : > { %4228 = vmatmul.mubr.msk.bf16.vlgmr.msra.gmra.mrb[20].mxu1 %vm499_vm2, %v4048_v21  ;;  %4231 = vmatprep.subr.bf16.mxu0 %v4501_v22 }
  0x56   : > { %1159 = vmatpush1.bf16.msra.mxu1 %v4651_v17  ;;  %1190 = vmatprep.mubr.bf16.mxu1 %v4500_v3 }
  0x57   : > { %4077 = vmatprep.subr.msk.bf16.mxu1 %vm503_vm0, %v4635_v12 }
  0x5b   : > { %4073 = vmatmul.mubr.msk.bf16.vlgmr.msra.gmra.mrb[24].mxu0 %vm499_vm2, %v470_v29 }
  0x5c   : > { %4232 = vmatpush3.bf16.msra.mxu0 %v4678_v27  ;;  %4233 = vmatprep.mubr.msk.bf16.mxu0 %vm4502_vm3, %v4501_v22 }
  0x5d   : > { %4075 = vmatmul.mubr.msk.bf16.vlgmr.msra.gmra.mrb[24].mxu1 %vm499_vm2, %v470_v29  ;;  %4079 = vmatprep.subr.msk.bf16.mxu0 %vm503_vm0, %v4648_v16 }
  0x5e   : > { %1240 = vmatpush1.bf16.msra.mxu1 %v4638_v13  ;;  %1271 = vmatprep.mubr.bf16.mxu1 %v4500_v3 }
  0x5f   : > { %4237 = vmatprep.subr.bf16.mxu1 %v4501_v22 }
  0x63   : > { %4234 = vmatmul.mubr.msk.bf16.vlgmr.msra.gmra.mrb[28].mxu0 %vm499_vm2, %v470_v29 }
  0x64   : > { %1281 = vmatpush1.bf16.msra.mxu0 %v4651_v17  ;;  %1312 = vmatprep.mubr.bf16.mxu0 %v4500_v3 }
  0x65   : > { %4078 = vmatmul.mubr.msk.bf16.vlgmr.msra.gmra.mrb[28].mxu1 %vm499_vm2, %v4061_v32  ;;  %4083 = vmatprep.subr.msk.bf16.mxu0 %vm503_vm0, %v4653_v18 }
  0x66   : > { %4238 = vmatpush3.bf16.msra.mxu1 %v4678_v27  ;;  %4239 = vmatprep.mubr.msk.bf16.mxu1 %vm4502_vm3, %v4501_v22 }
  0x67   : > { %4085 = vmatprep.subr.msk.bf16.mxu1 %vm503_vm0, %v4674_v25 }
  0x6b   : > { %4080 = vmatmul.mubr.msk.bf16.vlgmr.msra.gmra.mrb[32].mxu0 %vm499_vm2, %v4061_v32 }
  0x6c   : > { %1399 = vmatpush1.bf16.msra.mxu0 %v4667_v24  ;;  %1430 = vmatprep.mubr.bf16.mxu0 %v4500_v3 }
  0x6d   : > { %4240 = vmatmul.mubr.msk.bf16.vlgmr.msra.gmra.mrb[32].mxu1 %vm499_vm2, %v4061_v32  ;;  %4243 = vmatprep.subr.bf16.mxu0 %v4501_v22 }
  0x6e   : > { %1440 = vmatpush1.bf16.msra.mxu1 %v4687_v30  ;;  %1471 = vmatprep.mubr.bf16.mxu1 %v4500_v3 }
  0x6f   : > { %4089 = vmatprep.subr.msk.bf16.mxu1 %vm503_vm0, %v4635_v12 }
  0x73   : > { %4084 = vmatmul.mubr.msk.bf16.vlgmr.msra.gmra.mrb[36].mxu0 %vm499_vm2, %v4082_v33 }
  0x74   : > { %4244 = vmatpush3.bf16.msra.mxu0 %v4690_v31  ;;  %4245 = vmatprep.mubr.msk.bf16.mxu0 %vm4502_vm3, %v4501_v22 }
  0x75   : > { %4086 = vmatmul.mubr.msk.bf16.vlgmr.msra.gmra.mrb[36].mxu1 %vm499_vm2, %v4082_v33  ;;  %4091 = vmatprep.subr.msk.bf16.mxu0 %vm503_vm0, %v4648_v16 }
  0x76   : > { %1559 = vmatpush1.bf16.msra.mxu1 %v4638_v13  ;;  %1590 = vmatprep.mubr.bf16.mxu1 %v4500_v3 }
  0x77   : > { %4249 = vmatprep.subr.bf16.mxu1 %v4501_v22 }
  0x7b   : > { %4246 = vmatmul.mubr.msk.bf16.vlgmr.msra.gmra.mrb[40].mxu0 %vm499_vm2, %v4082_v33 }
  0x7c   : > { %1600 = vmatpush1.bf16.msra.mxu0 %v4651_v17  ;;  %1631 = vmatprep.mubr.bf16.mxu0 %v4500_v3 }
  0x7d   : > { %4090 = vmatmul.mubr.msk.bf16.vlgmr.msra.gmra.mrb[40].mxu1 %vm499_vm2, %v4088_v34  ;;  %4095 = vmatprep.subr.msk.bf16.mxu0 %vm503_vm0, %v4653_v18 }
  0x7e   : > { %4250 = vmatpush3.bf16.msra.mxu1 %v4678_v27  ;;  %4251 = vmatprep.mubr.msk.bf16.mxu1 %vm4502_vm3, %v4501_v22 }
  0x7f   : > { %4097 = vmatprep.subr.msk.bf16.mxu1 %vm503_vm0, %v4674_v25 }
  0x83   : > { %4092 = vmatmul.mubr.msk.bf16.vlgmr.msra.gmra.mrb[44].mxu0 %vm499_vm2, %v4088_v34 }
  0x84   : > { %1718 = vmatpush1.bf16.msra.mxu0 %v4667_v24  ;;  %1749 = vmatprep.mubr.bf16.mxu0 %v4500_v3 }
  0x85   : > { %4252 = vmatmul.mubr.msk.bf16.vlgmr.msra.gmra.mrb[44].mxu1 %vm499_vm2, %v4088_v34  ;;  %4255 = vmatprep.subr.bf16.mxu0 %v4501_v22 }
  0x86   : > { %1759 = vmatpush1.bf16.msra.mxu1 %v4687_v30  ;;  %1790 = vmatprep.mubr.bf16.mxu1 %v4500_v3 }
  0x87   : > { %4100 = vmatprep.subr.msk.bf16.mxu1 %vm503_vm0, %v4635_v12 }
  0x8b   : > { %4096 = vmatmul.mubr.msk.bf16.vlgmr.msra.gmra.mrb[48].mxu0 %vm499_vm2, %v4094_v36 }
  0x8c   : > { %4256 = vmatpush3.bf16.msra.mxu0 %v4690_v31  ;;  %4257 = vmatprep.mubr.msk.bf16.mxu0 %vm4502_vm3, %v4501_v22 }
  0x8d   : > { %4098 = vmatmul.mubr.msk.bf16.vlgmr.msra.gmra.mrb[48].mxu1 %vm499_vm2, %v4094_v36  ;;  %4102 = vmatprep.subr.msk.bf16.mxu0 %vm503_vm0, %v4648_v16 }
  0x8e   : > { %1873 = vmatpush1.bf16.msra.mxu1 %v4638_v13  ;;  %1904 = vmatprep.mubr.bf16.mxu1 %v4500_v3 }
  0x8f   : > { %4261 = vmatprep.subr.bf16.mxu1 %v4501_v22 }
  0x93   : > { %4258 = vmatmul.mubr.msk.bf16.vlgmr.msra.gmra.mrb[52].mxu0 %vm499_vm2, %v4094_v36 }
  0x94   : > { %1914 = vmatpush1.bf16.msra.mxu0 %v4651_v17  ;;  %1945 = vmatprep.mubr.bf16.mxu0 %v4500_v3 }
  0x95   : > { %4101 = vmatmul.mubr.msk.bf16.vlgmr.msra.gmra.mrb[52].mxu1 %vm499_vm2, %v4082_v33  ;;  %4105 = vmatprep.subr.msk.bf16.mxu0 %vm503_vm0, %v4653_v18 }
  0x96   : > { %4262 = vmatpush3.bf16.msra.mxu1 %v4678_v27  ;;  %4263 = vmatprep.mubr.msk.bf16.mxu1 %vm4502_vm3, %v4501_v22 }
  0x97   : > { %4107 = vmatprep.subr.msk.bf16.mxu1 %vm503_vm0, %v4674_v25 }
  0x9b   : > { %4103 = vmatmul.mubr.msk.bf16.vlgmr.msra.gmra.mrb[56].mxu0 %vm499_vm2, %v4082_v33 }
  0x9c   : > { %2027 = vmatpush1.bf16.msra.mxu0 %v4667_v24  ;;  %2058 = vmatprep.mubr.bf16.mxu0 %v4500_v3 }
  0x9d   : > { %4264 = vmatmul.mubr.msk.bf16.vlgmr.msra.gmra.mrb[56].mxu1 %vm499_vm2, %v4082_v33  ;;  %4267 = vmatprep.subr.bf16.mxu0 %v4501_v22 }
  0x9e   : > { %2068 = vmatpush1.bf16.msra.mxu1 %v4687_v30  ;;  %2099 = vmatprep.mubr.bf16.mxu1 %v4500_v3 }
  0x9f   : > { %4110 = vmatprep.subr.msk.bf16.mxu1 %vm503_vm0, %v4635_v12 }
  0xa3   : > { %4106 = vmatmul.mubr.msk.bf16.vlgmr.msra.gmra.mrb[60].mxu0 %vm499_vm2, %v4088_v34 }
  0xa4   : > { %4268 = vmatpush3.bf16.msra.mxu0 %v4690_v31  ;;  %4269 = vmatprep.mubr.msk.bf16.mxu0 %vm4502_vm3, %v4501_v22 }
  0xa5   : > { %4108 = vmatmul.mubr.msk.bf16.vlgmr.msra.gmra.mrb[60].mxu1 %vm499_vm2, %v4088_v34  ;;  %4112 = vmatprep.subr.msk.bf16.mxu0 %vm503_vm0, %v4648_v16 }
  0xa6   : > { %2181 = vmatpush1.bf16.msra.mxu1 %v4638_v13  ;;  %2212 = vmatprep.mubr.bf16.mxu1 %v4500_v3 }
  0xa7   : > { %4273 = vmatprep.subr.bf16.mxu1 %v4501_v22 }
  0xab   : > { %4270 = vmatmul.mubr.msk.bf16.vlgmr.msra.gmra.mrb[64].mxu0 %vm499_vm2, %v4088_v34 }
  0xac   : > { %2222 = vmatpush1.bf16.msra.mxu0 %v4651_v17  ;;  %2253 = vmatprep.mubr.bf16.mxu0 %v4500_v3 }
  0xad   : > { %4111 = vmatmul.mubr.msk.bf16.vlgmr.msra.gmra.mrb[64].mxu1 %vm499_vm2, %v4094_v36  ;;  %4116 = vmatprep.subr.msk.bf16.mxu0 %vm503_vm0, %v4653_v18 }
  0xae   : > { %4274 = vmatpush3.bf16.msra.mxu1 %v4678_v27  ;;  %4275 = vmatprep.mubr.msk.bf16.mxu1 %vm4502_vm3, %v4501_v22 }
  0xaf   : > { %4118 = vmatprep.subr.msk.bf16.mxu1 %vm503_vm0, %v4674_v25 }
  0xb3   : > { %4113 = vmatmul.mubr.msk.bf16.vlgmr.msra.gmra.mrb[68].mxu0 %vm499_vm2, %v4094_v36 }
  0xb4   : > { %2340 = vmatpush1.bf16.msra.mxu0 %v4667_v24  ;;  %2371 = vmatprep.mubr.bf16.mxu0 %v4500_v3 }
  0xb5   : > { %4276 = vmatmul.mubr.msk.bf16.vlgmr.msra.gmra.mrb[68].mxu1 %vm499_vm2, %v4094_v36  ;;  %4279 = vmatprep.subr.bf16.mxu0 %v4501_v22 }
  0xb6   : > { %2381 = vmatpush1.bf16.msra.mxu1 %v4687_v30  ;;  %2412 = vmatprep.mubr.bf16.mxu1 %v4500_v3 }
  0xb7   : > { %4122 = vmatprep.subr.msk.bf16.mxu1 %vm503_vm0, %v4635_v12 }
  0xbb   : > { %4117 = vmatmul.mubr.msk.bf16.vlgmr.msra.gmra.mrb[72].mxu0 %vm499_vm2, %v4115_v37 }
  0xbc   : > { %4280 = vmatpush3.bf16.msra.mxu0 %v4690_v31  ;;  %4281 = vmatprep.mubr.msk.bf16.mxu0 %vm4502_vm3, %v4501_v22 }
  0xbd   : > { %4119 = vmatmul.mubr.msk.bf16.vlgmr.msra.gmra.mrb[72].mxu1 %vm499_vm2, %v4115_v37  ;;  %4124 = vmatprep.subr.msk.bf16.mxu0 %vm503_vm0, %v4648_v16 }
  0xbe   : > { %2500 = vmatpush1.bf16.msra.mxu1 %v4638_v13  ;;  %2531 = vmatprep.mubr.bf16.mxu1 %v4500_v3 }
  0xbf   : > { %4285 = vmatprep.subr.bf16.mxu1 %v4501_v22 }
  0xc3   : > { %4282 = vmatmul.mubr.msk.bf16.vlgmr.msra.gmra.mrb[76].mxu0 %vm499_vm2, %v4115_v37 }
  0xc4   : > { %2541 = vmatpush1.bf16.msra.mxu0 %v4651_v17  ;;  %2572 = vmatprep.mubr.bf16.mxu0 %v4500_v3 }
  0xc5   : > { %4123 = vmatmul.mubr.msk.bf16.vlgmr.msra.gmra.mrb[76].mxu1 %vm499_vm2, %v4121_v38  ;;  %4128 = vmatprep.subr.msk.bf16.mxu0 %vm503_vm0, %v4653_v18 }
  0xc6   : > { %4286 = vmatpush3.bf16.msra.mxu1 %v4678_v27  ;;  %4287 = vmatprep.mubr.msk.bf16.mxu1 %vm4502_vm3, %v4501_v22 }
  0xc7   : > { %4130 = vmatprep.subr.msk.bf16.mxu1 %vm503_vm0, %v4674_v25 }
  0xcb   : > { %4125 = vmatmul.mubr.msk.bf16.vlgmr.msra.gmra.mrb[80].mxu0 %vm499_vm2, %v4121_v38 }
  0xcc   : > { %2659 = vmatpush1.bf16.msra.mxu0 %v4667_v24  ;;  %2690 = vmatprep.mubr.bf16.mxu0 %v4500_v3 }
  0xcd   : > { %4288 = vmatmul.mubr.msk.bf16.vlgmr.msra.gmra.mrb[80].mxu1 %vm499_vm2, %v4121_v38  ;;  %4291 = vmatprep.subr.bf16.mxu0 %v4501_v22 }
  0xce   : > { %2700 = vmatpush1.bf16.msra.mxu1 %v4687_v30  ;;  %2731 = vmatprep.mubr.bf16.mxu1 %v4500_v3 }
  0xcf   : > { %4133 = vmatprep.subr.msk.bf16.mxu1 %vm503_vm0, %v4635_v12 }
  0xd3   : > { %4129 = vmatmul.mubr.msk.bf16.vlgmr.msra.gmra.mrb[84].mxu0 %vm499_vm2, %v4127_v39 }
  0xd4   : > { %4292 = vmatpush3.bf16.msra.mxu0 %v4690_v31  ;;  %4293 = vmatprep.mubr.msk.bf16.mxu0 %vm4502_vm3, %v4501_v22 }
  0xd5   : > { %4131 = vmatmul.mubr.msk.bf16.vlgmr.msra.gmra.mrb[84].mxu1 %vm499_vm2, %v4127_v39  ;;  %4135 = vmatprep.subr.msk.bf16.mxu0 %vm503_vm0, %v4648_v16 }
  0xd6   : > { %2821 = vmatpush1.bf16.msra.mxu1 %v4638_v13  ;;  %2852 = vmatprep.mubr.bf16.mxu1 %v4500_v3 }
  0xd7   : > { %4297 = vmatprep.subr.bf16.mxu1 %v4501_v22 }
  0xdb   : > { %4294 = vmatmul.mubr.msk.bf16.vlgmr.msra.gmra.mrb[88].mxu0 %vm499_vm2, %v4127_v39 }
  0xdc   : > { %2862 = vmatpush1.bf16.msra.mxu0 %v4651_v17  ;;  %2893 = vmatprep.mubr.bf16.mxu0 %v4500_v3 }
  0xdd   : > { %4134 = vmatmul.mubr.msk.bf16.vlgmr.msra.gmra.mrb[88].mxu1 %vm499_vm2, %v4115_v37  ;;  %4138 = vmatprep.subr.msk.bf16.mxu0 %vm503_vm0, %v4653_v18 }
  0xde   : > { %4298 = vmatpush3.bf16.msra.mxu1 %v4678_v27  ;;  %4299 = vmatprep.mubr.msk.bf16.mxu1 %vm4502_vm3, %v4501_v22 }
  0xdf   : > { %4140 = vmatprep.subr.msk.bf16.mxu1 %vm503_vm0, %v4674_v25 }
  0xe3   : > { %4136 = vmatmul.mubr.msk.bf16.vlgmr.msra.gmra.mrb[92].mxu0 %vm499_vm2, %v4115_v37 }
  0xe4   : > { %2975 = vmatpush1.bf16.msra.mxu0 %v4667_v24  ;;  %3006 = vmatprep.mubr.bf16.mxu0 %v4500_v3 }
  0xe5   : > { %4300 = vmatmul.mubr.msk.bf16.vlgmr.msra.gmra.mrb[92].mxu1 %vm499_vm2, %v4115_v37  ;;  %4303 = vmatprep.subr.bf16.mxu0 %v4501_v22 }
  0xe6   : > { %3016 = vmatpush1.bf16.msra.mxu1 %v4687_v30  ;;  %3047 = vmatprep.mubr.bf16.mxu1 %v4500_v3 }
  0xe7   : > { %4143 = vmatprep.subr.msk.bf16.mxu1 %vm503_vm0, %v4635_v12 }
  0xeb   : > { %4139 = vmatmul.mubr.msk.bf16.vlgmr.msra.gmra.mrb[96].mxu0 %vm499_vm2, %v4121_v38 }
  0xec   : > { %4304 = vmatpush3.bf16.msra.mxu0 %v4690_v31  ;;  %4305 = vmatprep.mubr.msk.bf16.mxu0 %vm4502_vm3, %v4501_v22 }
  0xed   : > { %4141 = vmatmul.mubr.msk.bf16.vlgmr.msra.gmra.mrb[96].mxu1 %vm499_vm2, %v4121_v38  ;;  %4145 = vmatprep.subr.msk.bf16.mxu0 %vm503_vm0, %v4648_v16 }
  0xee   : > { %3136 = vmatpush1.bf16.msra.mxu1 %v4638_v13  ;;  %3167 = vmatprep.mubr.bf16.mxu1 %v4500_v3 }
  0xef   : > { %4309 = vmatprep.subr.bf16.mxu1 %v4501_v22 }
  0xf3   : > { %4306 = vmatmul.mubr.msk.bf16.vlgmr.msra.gmra.mrb[100].mxu0 %vm499_vm2, %v4121_v38 }
  0xf4   : > { %3177 = vmatpush1.bf16.msra.mxu0 %v4651_v17  ;;  %3208 = vmatprep.mubr.bf16.mxu0 %v4500_v3 }
  0xf5   : > { %4144 = vmatmul.mubr.msk.bf16.vlgmr.msra.gmra.mrb[100].mxu1 %vm499_vm2, %v4127_v39 }
  0xf6   : > { %4310 = vmatpush3.bf16.msra.mxu1 %v4678_v27  ;;  %4311 = vmatprep.mubr.msk.bf16.mxu1 %vm4502_vm3, %v4501_v22 }
  0xfb   : > { %4146 = vmatmul.mubr.msk.bf16.vlgmr.msra.gmra.mrb[104].mxu0 %vm499_vm2, %v4127_v39 }
  0xfd   : > { %4312 = vmatmul.mubr.msk.bf16.vlgmr.msra.gmra.mrb[104].mxu1 %vm499_vm2, %v4127_v39 }
  0xfe   : > { %v553_v40 = vpop.f32.mrb[0].mxu0 }
  0xff   : > { %v555_v41 = vpop.f32.mrb[1].mxu0 }
 0x100   : > { %v557_v42 = vpop.f32.mrb[2].mxu0  ;;  %v594_v43 = vpop.f32.mrb[0].mxu1 }
 0x101   : > { %v558_v44 = vpop.f32.mrb[3].mxu0  ;;  %v596_v45 = vpop.f32.mrb[1].mxu1 }
 0x102   : > { %v598_v46 = vpop.f32.mrb[2].mxu1 }
 0x103   : > { %v599_v47 = vpop.f32.mrb[3].mxu1 }
 0x106   : > { %v635_v48 = vpop.f32.mrb[4].mxu0 }
 0x107   : > { %v4211_v49 = vpop.f32.mrb[5].mxu0 }
 0x108   : > { %v719_v50 = vpop.f32.mrb[4].mxu1  ;;  %v638_v51 = vpop.f32.mrb[6].mxu0 }
 0x109   : > { %v4965_v52 = vadd.f32 %v719_v50, %v553_v40  ;;  %v721_v53 = vpop.f32.mrb[5].mxu1  ;;  %v4212_v54 = vpop.f32.mrb[7].mxu0 }
 0x10a   : > { %v4967_v55 = vadd.f32 %v721_v53, %v555_v41  ;;  %v723_v56 = vpop.f32.mrb[6].mxu1 }
 0x10b   : > { %v724_v57 = vpop.f32.mrb[7].mxu1 }
 0x10e   : > { %v760_v58 = vpop.f32.mrb[8].mxu0 }
 0x10f   : > { %v4969_v59 = vadd.f32 %v760_v58, %v594_v43  ;;  %v762_v60 = vpop.f32.mrb[9].mxu0 }
 0x110   : > { %v801_v61 = vpop.f32.mrb[8].mxu1  ;;  %v4971_v62 = vadd.f32 %v762_v60, %v596_v45  ;;  %v764_v63 = vpop.f32.mrb[10].mxu0 }
 0x111   : > { %v4973_v0 = vadd.f32 %v801_v61, %v635_v48  ;;  %v4217_v1 = vpop.f32.mrb[9].mxu1  ;;  %v765_v2 = vpop.f32.mrb[11].mxu0 }
 0x112   : > { %v804_v3 = vpop.f32.mrb[10].mxu1 }
 0x113   : > { %v4218_v5 = vpop.f32.mrb[11].mxu1 }
 0x116   : > { %v846_v6 = vpop.f32.mrb[12].mxu0 }
 0x117   : > { %943 = vrot.lane.b32.xlu0 %v846_v6, %s4503_s18  ;;  %935 = vrot.lane.b32.xlu1 %v846_v6, %s4504_s29  ;;  %v848_v7 = vpop.f32.mrb[13].mxu0 }
 0x118   : > { %v887_v8 = vpop.f32.mrb[12].mxu1  ;;  %v850_v9 = vpop.f32.mrb[14].mxu0 }
 0x119   : > { %v889_v10 = vpop.f32.mrb[13].mxu1  ;;  %v851_v11 = vpop.f32.mrb[15].mxu0 }
 0x11a   : > { %v891_v12 = vpop.f32.mrb[14].mxu1 }
 0x11b   : > { %v892_v13 = vpop.f32.mrb[15].mxu1  ;;  %947 = vrot.lane.b32.xlu0 %v887_v8, %s4503_s18  ;;  %945 = vrot.lane.b32.xlu1 %v848_v7, %s4503_s18 }
 0x11e   : > { %v4979_v14 = vpop.f32.mrb[16].mxu0 }
 0x11f   : > { %949 = vrot.lane.b32.xlu1 %v889_v10, %s4503_s18  ;;  %v4223_v15 = vpop.f32.mrb[17].mxu0 }
 0x120   : > { %v1002_v16 = vpop.f32.mrb[16].mxu1  ;;  %v931_v17 = vpop.f32.mrb[18].mxu0 }
 0x121   : > { %v1004_v18 = vpop.f32.mrb[17].mxu1  ;;  %1090 = vrot.lane.b32.xlu0 %v1002_v16, %s4504_s29  ;;  %v4224_v19 = vpop.f32.mrb[19].mxu0 }
 0x122   : > { %v1006_v20 = vpop.f32.mrb[18].mxu1 }
 0x123   : > { %v1007_v21 = vpop.f32.mrb[19].mxu1  ;;  %1100 = vrot.lane.b32.xlu1 %v1004_v18, %s4503_s18 }
 0x125   : > { %1098 = vrot.lane.b32.xlu0 %v1002_v16, %s4503_s18 }
 0x126   : > { %v1043_v22 = vpop.f32.mrb[20].mxu0 }
 0x127   : > { %1102 = vrot.lane.b32.xlu1 %v1043_v22, %s4503_s18  ;;  %v1045_v23 = vpop.f32.mrb[21].mxu0 }
 0x128   : > { %v4986_v24 = vpop.f32.mrb[20].mxu1  ;;  %v1047_v25 = vpop.f32.mrb[22].mxu0 }
 0x129   : > { %v4229_v26 = vpop.f32.mrb[21].mxu1  ;;  %1104 = vrot.lane.b32.xlu0 %v1045_v23, %s4503_s18  ;;  %v1048_v27 = vpop.f32.mrb[23].mxu0 }
 0x12a   : > { %v1087_v28 = vpop.f32.mrb[22].mxu1 }
 0x12b   : > { %v4230_v29 = vpop.f32.mrb[23].mxu1 }
 0x12e   : > { %v4989_v30 = vpop.f32.mrb[24].mxu0 }
 0x12f   : > { %v4991_v31 = vpop.f32.mrb[25].mxu0 }
 0x130   : > { %v4993_v32 = vpop.f32.mrb[24].mxu1  ;;  %v1155_v33 = vpop.f32.mrb[26].mxu0 }
 0x131   : > { %v4995_v34 = vpop.f32.mrb[25].mxu1  ;;  %v1156_v35 = vpop.f32.mrb[27].mxu0 }
 0x132   : > { %v1196_v36 = vpop.f32.mrb[26].mxu1 }
 0x133   : > { %v1197_v37 = vpop.f32.mrb[27].mxu1 }
 0x136   : > { %v4997_v38 = vpop.f32.mrb[28].mxu0 }
 0x137   : > { %v4235_v39 = vpop.f32.mrb[29].mxu0 }
 0x138   : > { %v1273_v40 = vpop.f32.mrb[28].mxu1  ;;  %v1236_v41 = vpop.f32.mrb[30].mxu0 }
 0x139   : > { %v1275_v42 = vpop.f32.mrb[29].mxu1  ;;  %1361 = vrot.lane.b32.xlu0 %v1273_v40, %s4504_s29  ;;  %1369 = vrot.lane.b32.xlu1 %v1273_v40, %s4503_s18  ;;  %v4236_v43 = vpop.f32.mrb[31].mxu0 }
 0x13a   : > { %v1277_v44 = vpop.f32.mrb[30].mxu1 }
 0x13b   : > { %v1278_v45 = vpop.f32.mrb[31].mxu1 }
 0x13d   : > { %1371 = vrot.lane.b32.xlu0 %v1275_v42, %s4503_s18 }
 0x13e   : > { %v1314_v46 = vpop.f32.mrb[32].mxu0 }
 0x13f   : > { %1373 = vrot.lane.b32.xlu1 %v1314_v46, %s4503_s18  ;;  %v1316_v47 = vpop.f32.mrb[33].mxu0 }
 0x140   : > { %v5003_v48 = vpop.f32.mrb[32].mxu1  ;;  %v1318_v49 = vpop.f32.mrb[34].mxu0 }
 0x141   : > { %v4241_v50 = vpop.f32.mrb[33].mxu1  ;;  %1375 = vrot.lane.b32.xlu0 %v1316_v47, %s4503_s18  ;;  %v1319_v51 = vpop.f32.mrb[35].mxu0 }
 0x142   : > { %v1358_v53 = vpop.f32.mrb[34].mxu1 }
 0x143   : > { %v4242_v54 = vpop.f32.mrb[35].mxu1 }
 0x146   : > { %v1432_v56 = vpop.f32.mrb[36].mxu0 }
 0x147   : > { %1528 = vrot.lane.b32.xlu0 %v1432_v56, %s4505_s8  ;;  %1520 = vrot.lane.b32.xlu1 %v1432_v56, %s4504_s29  ;;  %v1434_v57 = vpop.f32.mrb[37].mxu0 }
 0x148   : > { %v1473_v58 = vpop.f32.mrb[36].mxu1  ;;  %v1436_v60 = vpop.f32.mrb[38].mxu0 }
 0x149   : > { %v1475_v61 = vpop.f32.mrb[37].mxu1  ;;  %v1437_v63 = vpop.f32.mrb[39].mxu0 }
 0x14a   : > { %v1477_v1 = vpop.f32.mrb[38].mxu1 }
 0x14b   : > { %v1478_v2 = vpop.f32.mrb[39].mxu1  ;;  %1532 = vrot.lane.b32.xlu0 %v1473_v58, %s4505_s8  ;;  %1530 = vrot.lane.b32.xlu1 %v1434_v57, %s4505_s8 }
 0x14e   : > { %v5010_v3 = vpop.f32.mrb[40].mxu0 }
 0x14f   : > { %1534 = vrot.lane.b32.xlu1 %v1475_v61, %s4505_s8  ;;  %v4247_v5 = vpop.f32.mrb[41].mxu0 }
 0x150   : > { %v1592_v6 = vpop.f32.mrb[40].mxu1  ;;  %v1517_v7 = vpop.f32.mrb[42].mxu0 }
 0x151   : > { %v1594_v8 = vpop.f32.mrb[41].mxu1  ;;  %1688 = vrot.lane.b32.xlu0 %v1592_v6, %s4505_s8  ;;  %v4248_v9 = vpop.f32.mrb[43].mxu0 }
 0x152   : > { %v1596_v10 = vpop.f32.mrb[42].mxu1 }
 0x153   : > { %v1597_v11 = vpop.f32.mrb[43].mxu1  ;;  %1680 = vrot.lane.b32.xlu1 %v1592_v6, %s4504_s29 }
 0x154   : > { %v5046_v11 = vpop.permute.xlu1 %3299 }
 0x156   : > { %v1633_v12 = vpop.f32.mrb[44].mxu0 }
 0x157   : > { %1690 = vrot.lane.b32.xlu1 %v1594_v8, %s4505_s8  ;;  %1692 = vrot.lane.b32.xlu0 %v1633_v12, %s4505_s8  ;;  %v1635_v13 = vpop.f32.mrb[45].mxu0 }
 0x158   : > { %v5017_v15 = vpop.f32.mrb[44].mxu1  ;;  %v1637_v16 = vpop.f32.mrb[46].mxu0 }
 0x159   : > { %v4253_v17 = vpop.f32.mrb[45].mxu1  ;;  %v1638_v18 = vpop.f32.mrb[47].mxu0 }
 0x15a   : > { %v1677_v19 = vpop.f32.mrb[46].mxu1 }
 0x15b   : > { %v4254_v20 = vpop.f32.mrb[47].mxu1  ;;  %1694 = vrot.lane.b32.xlu1 %v1635_v13, %s4505_s8 }
 0x15e   : > { %v1751_v21 = vpop.f32.mrb[48].mxu0 }
 0x15f   : > { %1839 = vrot.lane.b32.xlu1 %v1751_v21, %s4504_s29  ;;  %v1753_v22 = vpop.f32.mrb[49].mxu0  ;;  %1847 = vrot.lane.b32.xlu0 %v1751_v21, %s4506_s30 }
 0x160   : > { %v5021_v23 = vpop.f32.mrb[48].mxu1  ;;  %v1755_v25 = vpop.f32.mrb[50].mxu0 }
 0x161   : > { %v5024_v26 = vpop.f32.mrb[49].mxu1  ;;  %v1756_v27 = vpop.f32.mrb[51].mxu0 }
 0x162   : > { %v1796_v28 = vpop.f32.mrb[50].mxu1 }
 0x163   : > { %v1797_v29 = vpop.f32.mrb[51].mxu1  ;;  %1849 = vrot.lane.b32.xlu1 %v1753_v22, %s4506_s30 }
 0x166   : > { %v5027_v33 = vpop.f32.mrb[52].mxu0 }
 0x167   : > { %v4259_v35 = vpop.f32.mrb[53].mxu0 }
 0x168   : > { %v1906_v36 = vpop.f32.mrb[52].mxu1  ;;  %v1836_v37 = vpop.f32.mrb[54].mxu0 }
 0x169   : > { %v1908_v39 = vpop.f32.mrb[53].mxu1  ;;  %1994 = vrot.lane.b32.xlu0 %v1906_v36, %s4504_s29  ;;  %2002 = vrot.lane.b32.xlu1 %v1906_v36, %s4505_s8  ;;  %v4260_v40 = vpop.f32.mrb[55].mxu0 }
 0x16a   : > { %v1910_v41 = vpop.f32.mrb[54].mxu1 }
 0x16b   : > { %v1911_v42 = vpop.f32.mrb[55].mxu1 }
 0x16d   : > { %2004 = vrot.lane.b32.xlu0 %v1908_v39, %s4505_s8 }
 0x16e   : > { %v1947_v43 = vpop.f32.mrb[56].mxu0 }
 0x16f   : > { %2006 = vrot.lane.b32.xlu1 %v1947_v43, %s4505_s8  ;;  %v1949_v44 = vpop.f32.mrb[57].mxu0 }
 0x170   : > { %v5033_v45 = vpop.f32.mrb[56].mxu1  ;;  %v1951_v46 = vpop.f32.mrb[58].mxu0 }
 0x171   : > { %v4265_v47 = vpop.f32.mrb[57].mxu1  ;;  %2008 = vrot.lane.b32.xlu0 %v1949_v44, %s4505_s8  ;;  %v1952_v49 = vpop.f32.mrb[59].mxu0 }
 0x172   : > { %v1991_v50 = vpop.f32.mrb[58].mxu1 }
 0x173   : > { %v4266_v51 = vpop.f32.mrb[59].mxu1 }
 0x176   : > { %v2060_v53 = vpop.f32.mrb[60].mxu0 }
 0x177   : > { %2156 = vrot.lane.b32.xlu1 %v2060_v53, %s4506_s30  ;;  %2148 = vrot.lane.b32.xlu0 %v2060_v53, %s4504_s29  ;;  %v2062_v54 = vpop.f32.mrb[61].mxu0 }
 0x178   : > { %v2101_v56 = vpop.f32.mrb[60].mxu1  ;;  %v2064_v57 = vpop.f32.mrb[62].mxu0 }
 0x179   : > { %v5038_v58 = vpop.f32.mrb[61].mxu1  ;;  %v2065_v60 = vpop.f32.mrb[63].mxu0 }
 0x17a   : > { %v2105_v61 = vpop.f32.mrb[62].mxu1 }
 0x17b   : > { %v2106_v63 = vpop.f32.mrb[63].mxu1  ;;  %2160 = vrot.lane.b32.xlu1 %v2101_v56, %s4506_s30  ;;  %2158 = vrot.lane.b32.xlu0 %v2062_v54, %s4506_s30 }
 0x17e   : > { %v5042_v1 = vpop.f32.mrb[64].mxu0 }
 0x17f   : > { %v4271_v2 = vpop.f32.mrb[65].mxu0 }
 0x180   : > { %v2214_v5 = vpop.f32.mrb[64].mxu1  ;;  %v2145_v6 = vpop.f32.mrb[66].mxu0 }
 0x181   : > { %v2216_v7 = vpop.f32.mrb[65].mxu1  ;;  %2302 = vrot.lane.b32.xlu0 %v2214_v5, %s4504_s29  ;;  %2310 = vrot.lane.b32.xlu1 %v2214_v5, %s4506_s30  ;;  %v4272_v8 = vpop.f32.mrb[67].mxu0 }
 0x182   : > { %v2218_v9 = vpop.f32.mrb[66].mxu1 }
 0x183   : > { %v2219_v10 = vpop.f32.mrb[67].mxu1 }
 0x185   : > { %2312 = vrot.lane.b32.xlu0 %v2216_v7, %s4506_s30 }
 0x186   : > { %v5049_v12 = vpop.f32.mrb[68].mxu0 }
 0x187   : > { %v5051_v13 = vpop.f32.mrb[69].mxu0 }
 0x188   : > { %v5053_v16 = vpop.f32.mrb[68].mxu1  ;;  %v2259_v17 = vpop.f32.mrb[70].mxu0 }
 0x189   : > { %v4277_v18 = vpop.f32.mrb[69].mxu1  ;;  %v5055_v19 = vpop.permute.xlu0 %943 }
 0x18a   : > { %v936_v20 = vpop.permute.xlu1 %935  ;;  %v2260_v21 = vpop.f32.mrb[71].mxu0 }
 0x18b   : > { %v2299_v22 = vpop.f32.mrb[70].mxu1  ;;  %v937_v25 = vsel %vm934_vm4, %v936_v20, %v4979_v14 }
 0x18c   : > { %v4278_v27 = vpop.f32.mrb[71].mxu1  ;;  %951 = vrot.lane.b32.xlu0 %v937_v25, %s4503_s18 }
 0x18d   : > { %v5060_v28 = vpop.permute.xlu0 %947 }
 0x18e   : > { %v2373_v29 = vpop.f32.mrb[72].mxu0  ;;  %v5069_v43 = vpop.permute.xlu1 %945 }
 0x18f   : > { %2461 = vrot.lane.b32.xlu1 %v2373_v29, %s4504_s29  ;;  %v2375_v35 = vpop.f32.mrb[73].mxu0 }
 0x190   : > { %v5063_v36 = vpop.f32.mrb[72].mxu1  ;;  %2469 = vrot.lane.b32.xlu0 %v2373_v29, %s4504_s29  ;;  %v2377_v37 = vpop.f32.mrb[74].mxu0 }
 0x191   : > { %v5066_v39 = vpop.f32.mrb[73].mxu1  ;;  %v2378_v40 = vpop.f32.mrb[75].mxu0 }
 0x192   : > { %v2418_v41 = vpop.f32.mrb[74].mxu1  ;;  %v5079_v57 = vpop.permute.xlu1 %949 }
 0x193   : > { %v2419_v42 = vpop.f32.mrb[75].mxu1  ;;  %v1091_v14 = vpop.permute.xlu0 %1090  ;;  %2471 = vrot.lane.b32.xlu1 %v2375_v35, %s4504_s29 }
 0x194   : > { %v1092_v46 = vsel %vm934_vm4, %v1091_v14, %v4986_v24 }
 0x196   : > { %v5071_v44 = vpop.f32.mrb[76].mxu0  ;;  %v5089_v9 = vpop.permute.xlu1 %1100 }
 0x197   : > { %1106 = vrot.lane.b32.xlu1 %v1092_v46, %s4503_s18  ;;  %v4283_v47 = vpop.f32.mrb[77].mxu0  ;;  %v5081_v60 = vpop.permute.xlu0 %1098 }
 0x198   : > { %v2533_v49 = vpop.f32.mrb[76].mxu1  ;;  %v2458_v50 = vpop.f32.mrb[78].mxu0 }
 0x199   : > { %v2535_v51 = vpop.f32.mrb[77].mxu1  ;;  %2621 = vrot.lane.b32.xlu0 %v2533_v49, %s4504_s29  ;;  %v4284_v53 = vpop.f32.mrb[79].mxu0 }
 0x19a   : > { %v2537_v54 = vpop.f32.mrb[78].mxu1  ;;  %v5101_v37 = vpop.permute.xlu1 %1102 }
 0x19b   : > { %v2538_v56 = vpop.f32.mrb[79].mxu1  ;;  %2629 = vrot.lane.b32.xlu1 %v2533_v49, %s4504_s29  ;;  %v5091_v10 = vpop.permute.xlu0 %1104 }
 0x19d   : > { %2631 = vrot.lane.b32.xlu0 %v2535_v51, %s4504_s29 }
 0x19e   : > { %v5083_v24 = vpop.f32.mrb[80].mxu0 }
 0x19f   : > { %v5085_v61 = vpop.f32.mrb[81].mxu0 }
 0x1a0   : > { %v5087_v63 = vpop.f32.mrb[80].mxu1  ;;  %v2578_v2 = vpop.f32.mrb[82].mxu0 }
 0x1a1   : > { %v4289_v5 = vpop.f32.mrb[81].mxu1  ;;  %v2579_v6 = vpop.f32.mrb[83].mxu0 }
 0x1a2   : > { %v2618_v7 = vpop.f32.mrb[82].mxu1 }
 0x1a3   : > { %v4290_v8 = vpop.f32.mrb[83].mxu1 }
 0x1a6   : > { %v2692_v17 = vpop.f32.mrb[84].mxu0 }
 0x1a7   : > { %2780 = vrot.lane.b32.xlu1 %v2692_v17, %s4504_s29  ;;  %v2694_v18 = vpop.f32.mrb[85].mxu0 }
 0x1a8   : > { %v5094_v20 = vpop.f32.mrb[84].mxu1  ;;  %2782 = vrot.lane.b32.xlu0 %v2694_v18, %s4504_s29  ;;  %v2696_v21 = vpop.f32.mrb[86].mxu0 }
 0x1a9   : > { %v5097_v22 = vpop.f32.mrb[85].mxu1  ;;  %v2697_v25 = vpop.f32.mrb[87].mxu0 }
 0x1aa   : > { %v2737_v27 = vpop.f32.mrb[86].mxu1 }
 0x1ab   : > { %v2738_v29 = vpop.f32.mrb[87].mxu1  ;;  %v1362_v35 = vpop.permute.xlu0 %1361  ;;  %2792 = vrot.lane.b32.xlu1 %v2692_v17, %s4507_s7 }
 0x1ac   : > { %2794 = vrot.lane.b32.xlu0 %v2694_v18, %s4507_s7  ;;  %v1363_v41 = vsel %vm934_vm4, %v1362_v35, %v5003_v48  ;;  %v5109_v49 = vpop.permute.xlu1 %1369 }
 0x1ae   : > { %v5103_v40 = vpop.f32.mrb[88].mxu0 }
 0x1af   : > { %1377 = vrot.lane.b32.xlu1 %v1363_v41, %s4503_s18  ;;  %v4295_v42 = vpop.f32.mrb[89].mxu0  ;;  %v5115_v48 = vpop.permute.xlu0 %1371  ;;  %s5791_s18 = scalar_lea.sflag [#allocation5], %s389_s9 }
 0x1b0   : > { %v2854_v14 = vpop.f32.mrb[88].mxu1  ;;  %v2777_v46 = vpop.f32.mrb[90].mxu0 }
 0x1b1   : > { %v2856_v47 = vpop.f32.mrb[89].mxu1  ;;  %2942 = vrot.lane.b32.xlu0 %v2854_v14, %s4504_s29  ;;  %v4296_v50 = vpop.f32.mrb[91].mxu0 }
 0x1b2   : > { %v2858_v51 = vpop.f32.mrb[90].mxu1  ;;  %v5113_v54 = vpop.permute.xlu1 %1373 }
 0x1b3   : > { %v2859_v53 = vpop.f32.mrb[91].mxu1  ;;  %2950 = vrot.lane.b32.xlu1 %v2854_v14, %s4504_s29  ;;  %v5128_v29 = vpop.permute.xlu0 %1375 }
 0x1b5   : > { %2952 = vrot.lane.b32.xlu0 %v2856_v47, %s4504_s29 }
 0x1b6   : > { %v5117_v56 = vpop.f32.mrb[92].mxu0 }
 0x1b7   : > { %v5119_v2 = vpop.f32.mrb[93].mxu0 }
 0x1b8   : > { %v5121_v5 = vpop.f32.mrb[92].mxu1  ;;  %v2899_v6 = vpop.f32.mrb[94].mxu0 }
 0x1b9   : > { %v4301_v7 = vpop.f32.mrb[93].mxu1  ;;  %v1521_v8 = vpop.permute.xlu1 %1520 }
 0x1ba   : > { %v2900_v17 = vpop.f32.mrb[95].mxu0  ;;  %v2939_v18 = vpop.f32.mrb[94].mxu1  ;;  %v1522_v21 = vsel %vm934_vm4, %v1521_v8, %v5010_v3 }
 0x1bb   : > { %v4302_v25 = vpop.f32.mrb[95].mxu1  ;;  %1536 = vrot.lane.b32.xlu0 %v1522_v21, %s4505_s8  ;;  %v5136_v51 = vpop.permute.xlu0 %1528 }
 0x1bd   : > { %v5126_v27 = vpop.permute.xlu1 %1530 }
 0x1be   : > { %v3008_v35 = vpop.f32.mrb[96].mxu0 }
 0x1bf   : > { %3108 = vrot.lane.b32.xlu1 %v3008_v35, %s4507_s7  ;;  %3096 = vrot.lane.b32.xlu0 %v3008_v35, %s4504_s29  ;;  %v3010_v41 = vpop.f32.mrb[97].mxu0  ;;  %v5146_v35 = vpop.permute.xlu0 %1532 }
 0x1c0   : > { %v3049_v42 = vpop.f32.mrb[96].mxu1  ;;  %v3012_v14 = vpop.f32.mrb[98].mxu0 }
 0x1c1   : > { %v5132_v46 = vpop.f32.mrb[97].mxu1  ;;  %v5134_v47 = vpop.permute.xlu1 %1534 }
 0x1c2   : > { %v3013_v3 = vpop.f32.mrb[99].mxu0  ;;  %v3053_v50 = vpop.f32.mrb[98].mxu1 }
 0x1c3   : > { %v3054_v53 = vpop.f32.mrb[99].mxu1  ;;  %3110 = vrot.lane.b32.xlu0 %v3010_v41, %s4507_s7  ;;  %3098 = vrot.lane.b32.xlu1 %v3010_v41, %s4504_s29 }
 0x1c5   : > { %v1681_v6 = vpop.permute.xlu1 %1680 }
 0x1c6   : > { %v1682_v7 = vsel %vm934_vm4, %v1681_v6, %v5017_v15  ;;  %v5142_v8 = vpop.f32.mrb[100].mxu0  ;;  %v5150_v15 = vpop.permute.xlu0 %1688 }
 0x1c7   : > { %1696 = vrot.lane.b32.xlu0 %v1682_v7, %s4505_s8  ;;  %v4307_v18 = vpop.f32.mrb[101].mxu0 }
 0x1c8   : > { %v3169_v17 = vpop.f32.mrb[100].mxu1  ;;  %v3093_v25 = vpop.f32.mrb[102].mxu0 }
 0x1c9   : > { %v3171_v21 = vpop.f32.mrb[101].mxu1  ;;  %3257 = vrot.lane.b32.xlu1 %v3169_v17, %s4504_s29  ;;  %v4308_v3 = vpop.f32.mrb[103].mxu0 }
 0x1ca   : > { %v3173_v14 = vpop.f32.mrb[102].mxu1  ;;  %v5152_v41 = vpop.permute.xlu1 %1690 }
 0x1cb   : > { %v3174_v50 = vpop.f32.mrb[103].mxu1  ;;  %3259 = vrot.lane.b32.xlu0 %v3171_v21, %s4504_s29  ;;  %v5163_v14 = vpop.permute.xlu0 %1692 }
 0x1cd   : > { %3269 = vrot.lane.b32.xlu1 %v3169_v17, %s4507_s7 }
 0x1ce   : > { %v5154_v53 = vpop.f32.mrb[104].mxu0 }
 0x1cf   : > { %3271 = vrot.lane.b32.xlu0 %v3171_v21, %s4507_s7  ;;  %v5159_v7 = vpop.f32.mrb[105].mxu0  ;;  %v5169_v21 = vpop.permute.xlu1 %1694 }
 0x1d0   : > { %v5157_v6 = vpop.f32.mrb[104].mxu1  ;;  %v3214_v25 = vpop.f32.mrb[106].mxu0 }
 0x1d1   : > { %1853 = vrot.lane.b32.xlu1 %v5024_v26, %s4506_s30  ;;  %v4313_v18 = vpop.f32.mrb[105].mxu1  ;;  %v3215_v3 = vpop.f32.mrb[107].mxu0 }
 0x1d2   : > { %v3254_v17 = vpop.f32.mrb[106].mxu1  ;;  %v5171_v4 = vpop.permute.xlu0 %1847 }
 0x1d3   : > { %2162 = vrot.lane.b32.xlu0 %v5038_v58, %s4506_s30  ;;  %v4314_v50 = vpop.f32.mrb[107].mxu1  ;;  %v1840_v18 = vpop.permute.xlu1 %1839 }
 0x1d4   : > { %v1841_v3 = vsel %vm934_vm4, %v1840_v18, %v5027_v33 }
 0x1d5   : > { %2314 = vrot.lane.b32.xlu1 %v5049_v12, %s4506_s30 }
 0x1d7   : > { %1851 = vrot.lane.b32.xlu0 %v5021_v23, %s4506_s30  ;;  %v5187_v23 = vpop.permute.xlu1 %1849 }
 0x1d9   : > { %2475 = vrot.lane.b32.xlu1 %v5066_v39, %s4504_s29  ;;  %v1108_v39 = vsel %vm953_vm5, %v5081_v60, %v5089_v9 }
 0x1db   : > { %v1995_v26 = vpop.permute.xlu0 %1994  ;;  %2316 = vrot.lane.b32.xlu0 %v5051_v13, %s4506_s30  ;;  %v2003_v12 = vpop.permute.xlu1 %2002 }
 0x1dd   : > { %2954 = vrot.lane.b32.xlu1 %v5117_v56, %s4504_s29 }
 0x1df   : > { %v5181_v58 = vpop.permute.xlu0 %2004  ;;  %2473 = vrot.lane.b32.xlu0 %v5063_v36, %s4504_s29  ;;  %v1379_v36 = vsel %vm953_vm5, %v5109_v49, %v5115_v48 }
 0x1e1   : > { %2635 = vrot.lane.b32.xlu1 %v5085_v61, %s4504_s29  ;;  %v1152_v61 = vadd.f32 %v4989_v30, %v1108_v39  ;;  %v5205_v56 = vpop.permute.xlu1 %2006 }
 0x1e3   : > { %2956 = vrot.lane.b32.xlu0 %v5119_v2, %s4504_s29  ;;  %v5192_v13 = vpop.permute.xlu0 %2008  ;;  %v1388_v60 = vadd.f32 %v1379_v36, %v1152_v61 }
 0x1e5   : > { %3112 = vrot.lane.b32.xlu1 %v3049_v42, %s4507_s7  ;;  %v2012_v42 = vsel %vm1538_vm6, %v2003_v12, %v5181_v58 }
 0x1e7   : > { %2633 = vrot.lane.b32.xlu0 %v5083_v24, %s4504_s29  ;;  %v1996_v24 = vsel %vm934_vm4, %v1995_v26, %v5033_v45 }
 0x1e9   : > { %2796 = vrot.lane.b32.xlu1 %v5094_v20, %s4507_s7  ;;  %v2149_v2 = vpop.permute.xlu0 %2148  ;;  %v2021_v20 = vadd.f32 %v2012_v42, %v1388_v60  ;;  %v2157_v49 = vpop.permute.xlu1 %2156 }
 0x1eb   : > { %3114 = vrot.lane.b32.xlu0 %v5132_v46, %s4507_s7  ;;  %v2150_v46 = vsel %vm934_vm4, %v2149_v2, %v5042_v1 }
 0x1ed   : > { %2010 = vrot.lane.b32.xlu1 %v1996_v24, %s4505_s8  ;;  %v5214_v30 = vpop.permute.xlu0 %2158  ;;  %v5231_v26 = vpop.permute.xlu1 %2160 }
 0x1ee   : > { %v2166_v25 = vsel %vm1857_vm7, %v2157_v49, %v5214_v30 }
 0x1ef   : > { %v5218_v17 = vadd.f32 %v2166_v25, %v2021_v20  ;;  %2798 = vrot.lane.b32.xlu0 %v5097_v22, %s4507_s7 }
 0x1f1   : > { %2164 = vrot.lane.b32.xlu1 %v2150_v46, %s4506_s30 }
 0x1f3   : > { %v2303_v45 = vpop.permute.xlu0 %2302  ;;  %1855 = vrot.lane.b32.xlu0 %v1841_v3, %s4506_s30  ;;  %v2311_v22 = vpop.permute.xlu1 %2310 }
 0x1f4   : > { %v2304_v50 = vsel %vm934_vm4, %v2303_v45, %v5053_v16 }
 0x1f5   : > { %2318 = vrot.lane.b32.xlu1 %v2304_v50, %s4506_s30 }
 0x1f7   : > { %v5233_v12 = vpop.permute.xlu0 %2312 }
 0x1fe   : > { %v952_v39 = vpop.permute.xlu0 %951 }
 0x1ff   : > { %v957_v1 = vsel %vm953_vm5, %v5079_v57, %v952_v39  ;;  %v967_v36 = vadd.f32 %v952_v39, %v4973_v0 }
 0x200   : > { %v966_v33 = vadd.f32 %v957_v1, %v4971_v62 }
 0x201   : > { %v2462_v18 = vpop.permute.xlu1 %2461 }
 0x202   : > { %v2463_v61 = vsel %vm934_vm4, %v2462_v18, %v5071_v44  ;;  %v2470_v2 = vpop.permute.xlu0 %2469 }
 0x203   : > { %2477 = vrot.lane.b32.xlu0 %v2463_v61, %s4504_s29 }
 0x205   : > { %v5242_v16 = vpop.permute.xlu1 %2471 }
 0x209   : > { %v1107_v42 = vpop.permute.xlu1 %1106 }
 0x20a   : > { %v1111_v60 = vsel %vm953_vm5, %v5091_v10, %v1107_v42  ;;  %v1234_v24 = vadd.f32 %v4997_v38, %v1107_v42 }
 0x20b   : > { %v2622_v20 = vpop.permute.xlu0 %2621  ;;  %v1195_v0 = vadd.f32 %v4995_v34, %v1111_v60 }
 0x20c   : > { %v2623_v62 = vsel %vm934_vm4, %v2622_v20, %v5087_v63 }
 0x20d   : > { %2637 = vrot.lane.b32.xlu0 %v2623_v62, %s4504_s29  ;;  %v2630_v44 = vpop.permute.xlu1 %2629 }
 0x20f   : > { %v5251_v49 = vpop.permute.xlu0 %2631 }
 0x219   : > { %v2781_v25 = vpop.permute.xlu1 %2780 }
 0x21a   : > { %v2783_v46 = vpop.permute.xlu0 %2782  ;;  %v2784_v45 = vsel %vm934_vm4, %v2781_v25, %v5103_v40 }
 0x21b   : > { %2800 = vrot.lane.b32.xlu1 %v2784_v45, %s4507_s7  ;;  %v2785_v38 = vsel %vm934_vm4, %v2783_v46, %v2781_v25 }
 0x21c   : > { %2802 = vrot.lane.b32.xlu0 %v2785_v38, %s4507_s7 }
 0x21d   : > { %v2793_v34 = vpop.permute.xlu1 %2792 }
 0x21e   : > { %v5258_v3 = vpop.permute.xlu0 %2794 }
 0x221   : > { %v1378_v63 = vpop.permute.xlu1 %1377 }
 0x222   : > { %v1382_v50 = vsel %vm953_vm5, %v5128_v29, %v1378_v63  ;;  %v5262_v39 = vadd.f32 %v1378_v63, %v1234_v24  ;;  %v954_v24 = vsel %vm953_vm5, %v5055_v19, %v5069_v43 }
 0x223   : > { %v2943_v1 = vpop.permute.xlu0 %2942  ;;  %v5264_v18 = vadd.f32 %v1382_v50, %v1195_v0  ;;  %v963_v38 = vadd.f32 %v954_v24, %v4965_v52  ;;  %v2480_v52 = vsel %vm2479_vm8, %v2470_v2, %v5242_v16 }
 0x224   : > { %v2944_v40 = vsel %vm934_vm4, %v2943_v1, %v5121_v5  ;;  %v1539_v5 = vsel %vm1538_vm6, %v5136_v51, %v5126_v27  ;;  %v1858_v51 = vsel %vm1857_vm7, %v5171_v4, %v5187_v23 }
 0x225   : > { %2958 = vrot.lane.b32.xlu1 %v2944_v40, %s4504_s29  ;;  %v2951_v42 = vpop.permute.xlu1 %2950  ;;  %v2320_v40 = vsel %vm1857_vm7, %v2311_v22, %v5233_v12 }
 0x227   : > { %v5269_v61 = vpop.permute.xlu0 %2952 }
 0x228   : > { %v2960_v22 = vsel %vm2479_vm8, %v2951_v42, %v5269_v61 }
 0x22d   : > { %v1537_v60 = vpop.permute.xlu0 %1536 }
 0x22e   : > { %v1542_v20 = vsel %vm1538_vm6, %v5134_v47, %v1537_v60  ;;  %v1552_v62 = vadd.f32 %v1537_v60, %v967_v36  ;;  %v1698_v36 = vsel %vm1538_vm6, %v5150_v15, %v5152_v41  ;;  %v2639_v60 = vsel %vm2479_vm8, %v2630_v44, %v5251_v49 }
 0x22f   : > { %v1551_v25 = vadd.f32 %v1542_v20, %v966_v33  ;;  %v1548_v33 = vadd.f32 %v1539_v5, %v963_v38  ;;  %v2329_v44 = vadd.f32 %v2320_v40, %v5218_v17 }
 0x231   : > { %v3109_v0 = vpop.permute.xlu1 %3108  ;;  %v3097_v46 = vpop.permute.xlu0 %3096 }
 0x232   : > { %v3100_v45 = vsel %vm934_vm4, %v3097_v46, %v5142_v8  ;;  %v1707_v8 = vadd.f32 %v1698_v36, %v1548_v33 }
 0x233   : > { %3116 = vrot.lane.b32.xlu0 %v3100_v45, %s4507_s7  ;;  %v2805_v45 = vsel %vm2804_vm9, %v2793_v34, %v5258_v3 }
 0x234   : > { %v1867_v1 = vadd.f32 %v1858_v51, %v1707_v8 }
 0x235   : > { %v5286_v19 = vpop.permute.xlu0 %3110  ;;  %v3099_v63 = vpop.permute.xlu1 %3098 }
 0x236   : > { %v3101_v50 = vsel %vm934_vm4, %v3099_v63, %v3097_v46  ;;  %v2489_v46 = vadd.f32 %v2480_v52, %v1867_v1  ;;  %v3120_v36 = vsel %vm2804_vm9, %v3109_v0, %v5286_v19  ;;  %v1109_v0 = vsel %vm953_vm5, %v5089_v9, %v5101_v37 }
 0x237   : > { %3118 = vrot.lane.b32.xlu1 %v3101_v50, %s4507_s7  ;;  %v2013_v9 = vsel %vm1538_vm6, %v5181_v58, %v5205_v56 }
 0x238   : > { %v2648_v38 = vadd.f32 %v2639_v60, %v2489_v46 }
 0x239   : > { %v1697_v15 = vpop.permute.xlu0 %1696 }
 0x23a   : > { %v1701_v4 = vsel %vm1538_vm6, %v5169_v21, %v1697_v15  ;;  %v5301_v20 = vadd.f32 %v1697_v15, %v1552_v62  ;;  %v2815_v63 = vadd.f32 %v2805_v45, %v2648_v38  ;;  %v1154_v15 = vadd.f32 %v4991_v31, %v1109_v0 }
 0x23b   : > { %v3258_v24 = vpop.permute.xlu1 %3257  ;;  %v5303_v5 = vadd.f32 %v1701_v4, %v1551_v25 }
 0x23c   : > { %v3261_v2 = vsel %vm934_vm4, %v3258_v24, %v5157_v6  ;;  %v2969_v6 = vadd.f32 %v2960_v22, %v2329_v44  ;;  %v3302_v50 = vadd.f32 %v5046_v11, %v2815_v63  ;;  %v1699_v63 = vsel %vm1538_vm6, %v5152_v41, %v5163_v14 }
 0x23d   : > { %3277 = vrot.lane.b32.xlu1 %v3261_v2, %s4507_s7  ;;  %v3260_v62 = vpop.permute.xlu0 %3259 }
 0x23e   : > { %v3262_v33 = vsel %vm934_vm4, %v3260_v62, %v3258_v24  ;;  %v3130_v34 = vadd.f32 %v3120_v36, %v2969_v6  ;;  %v3307_v60 = vmax.f32 %v3302_v50, 0.0 }
 0x23f   : > { %v3270_v25 = vpop.permute.xlu1 %3269  ;;  %3279 = vrot.lane.b32.xlu0 %v3262_v33, %s4507_s7 }
 0x241   : > { %3273 = vrot.lane.b32.xlu1 %v5154_v53, %s4507_s7  ;;  %v5319_v42 = vpop.permute.xlu0 %3271  ;;  %v1380_v53 = vsel %vm953_vm5, %v5115_v48, %v5113_v54 }
 0x242   : > { %v3281_v17 = vsel %vm2804_vm9, %v3270_v25, %v5319_v42  ;;  %v1389_v24 = vadd.f32 %v1380_v53, %v1154_v15 }
 0x243   : > { %v5323_v51 = vpop.permute.xlu1 %1853  ;;  %v3291_v8 = vadd.f32 %v3281_v17, %v3130_v34  ;;  %3275 = vrot.lane.b32.xlu0 %v5159_v7, %s4507_s7  ;;  %v2167_v7 = vsel %vm1857_vm7, %v5214_v30, %v5231_v26  ;;  %v955_v30 = vsel %vm953_vm5, %v5069_v43, %v5060_v28 }
 0x244   : > { %v2022_v2 = vadd.f32 %v2013_v9, %v1389_v24  ;;  %v964_v25 = vadd.f32 %v955_v30, %v4967_v55 }
 0x245   : > { %v3312_v52 = vadd.f32 %v5046_v11, %v3291_v8  ;;  %v5335_v1 = vpop.permute.xlu0 %2162 }
 0x246   : > { %v2176_v58 = vadd.f32 %v2167_v7, %v2022_v2 }
 0x247   : > { %v5338_v40 = vpop.permute.xlu1 %2314  ;;  %v3317_v4 = vmax.f32 %v3312_v52, 0.0 }
 0x248   : > { %v2321_v31 = vsel %vm1857_vm7, %v5233_v12, %v5338_v40  ;;  %v1540_v12 = vsel %vm1538_vm6, %v5126_v27, %v5146_v35 }
 0x249   : > { %v5346_v48 = vmax.f32 %v3307_v60, %v3317_v4  ;;  %v1852_v46 = vpop.permute.xlu0 %1851  ;;  %v2330_v44 = vadd.f32 %v2321_v31, %v2176_v58  ;;  %v1549_v43 = vadd.f32 %v1540_v12, %v964_v25  ;;  %v956_v31 = vsel %vm953_vm5, %v5060_v28, %v5079_v57 }
 0x24a   : > { %v1859_v34 = vsel %vm1857_vm7, %v5187_v23, %v1852_v46  ;;  %v1541_v58 = vsel %vm1538_vm6, %v5146_v35, %v5134_v47  ;;  %v1700_v28 = vsel %vm1538_vm6, %v5163_v14, %v5169_v21  ;;  %v2014_v57 = vsel %vm1538_vm6, %v5205_v56, %v5192_v13 }
 0x24b   : > { %v5348_v45 = vpop.permute.xlu1 %2475  ;;  %3335 = vrot.lane.b32.xlu0 %v5346_v48, %s4505_s8  ;;  %3327 = vrot.lane.b32.xlu1 %v5346_v48, %s4504_s29  ;;  %v1708_v17 = vadd.f32 %v1699_v63, %v1549_v43 }
 0x24d   : > { %v5357_v22 = vpop.permute.xlu0 %2316  ;;  %v1868_v55 = vadd.f32 %v1859_v34, %v1708_v17 }
 0x24e   : > { %v2322_v14 = vsel %vm1857_vm7, %v5338_v40, %v5357_v22 }
 0x24f   : > { %v2955_v38 = vpop.permute.xlu1 %2954 }
 0x250   : > { %v2961_v62 = vsel %vm2479_vm8, %v5269_v61, %v2955_v38 }
 0x251   : > { %v2970_v36 = vadd.f32 %v2961_v62, %v2330_v44  ;;  %v2474_v33 = vpop.permute.xlu0 %2473  ;;  %v965_v44 = vadd.f32 %v956_v31, %v4969_v59  ;;  %v1860_v59 = vsel %vm1857_vm7, %v1852_v46, %v5323_v51 }
 0x252   : > { %v2481_v27 = vsel %vm2479_vm8, %v5242_v16, %v2474_v33  ;;  %v2482_v21 = vsel %vm2479_vm8, %v2474_v33, %v5348_v45 }
 0x253   : > { %v5371_v6 = vpop.permute.xlu1 %2635  ;;  %v2490_v8 = vadd.f32 %v2481_v27, %v1868_v55 }
 0x255   : > { %v5375_v61 = vpop.permute.xlu0 %2956 }
 0x256   : > { %v2962_v33 = vsel %vm2479_vm8, %v2955_v38, %v5375_v61 }
 0x257   : > { %v5379_v0 = vpop.permute.xlu1 %3112 }
 0x258   : > { %v3121_v50 = vsel %vm2804_vm9, %v5286_v19, %v5379_v0 }
 0x259   : > { %v5384_v41 = vadd.f32 %v3121_v50, %v2970_v36  ;;  %v2634_v53 = vpop.permute.xlu0 %2633 }
 0x25a   : > { %v2640_v23 = vsel %vm2479_vm8, %v5251_v49, %v2634_v53  ;;  %v1110_v49 = vsel %vm953_vm5, %v5101_v37, %v5091_v10  ;;  %v1550_v37 = vadd.f32 %v1541_v58, %v965_v44  ;;  %v2641_v25 = vsel %vm2479_vm8, %v2634_v53, %v5371_v6 }
 0x25b   : > { %v2797_v52 = vpop.permute.xlu1 %2796  ;;  %v2649_v15 = vadd.f32 %v2640_v23, %v2490_v8  ;;  %v1193_v62 = vadd.f32 %v4993_v32, %v1110_v49 }
 0x25c   : > { %v2806_v9 = vsel %vm2804_vm9, %v5258_v3, %v2797_v52  ;;  %v1381_v3 = vsel %vm953_vm5, %v5113_v54, %v5128_v29  ;;  %v2168_v54 = vsel %vm1857_vm7, %v5231_v26, %v5335_v1  ;;  %v1709_v32 = vadd.f32 %v1700_v28, %v1550_v37 }
 0x25d   : > { %v5390_v16 = vadd.f32 %v2806_v9, %v2649_v15  ;;  %v5392_v60 = vpop.permute.xlu0 %3114  ;;  %v1390_v10 = vadd.f32 %v1381_v3, %v1193_v62 }
 0x25e   : > { %v1869_v36 = vadd.f32 %v1860_v59, %v1709_v32 }
 0x25f   : > { %v2011_v4 = vpop.permute.xlu1 %2010  ;;  %v2023_v47 = vadd.f32 %v2014_v57, %v1390_v10 }
 0x260   : > { %v2025_v26 = vadd.f32 %v2011_v4, %v5262_v39  ;;  %v2491_v17 = vadd.f32 %v2482_v21, %v1869_v36  ;;  %v2015_v40 = vsel %vm1538_vm6, %v5192_v13, %v2011_v4 }
 0x261   : > { %v2799_v24 = vpop.permute.xlu0 %2798  ;;  %v2177_v56 = vadd.f32 %v2168_v54, %v2023_v47  ;;  %v2024_v23 = vadd.f32 %v2015_v40, %v5264_v18  ;;  %v3303_v54 = vadd.f32 %v5046_v11, %v5390_v16 }
 0x262   : > { %v2650_v8 = vadd.f32 %v2641_v25, %v2491_v17  ;;  %v2807_v4 = vsel %vm2804_vm9, %v2797_v52, %v2799_v24 }
 0x263   : > { %v2165_v7 = vpop.permute.xlu1 %2164  ;;  %v2331_v34 = vadd.f32 %v2322_v14, %v2177_v56 }
 0x264   : > { %v2179_v55 = vadd.f32 %v2165_v7, %v2025_v26 }
 0x265   : > { %v1856_v19 = vpop.permute.xlu0 %1855  ;;  %v2971_v58 = vadd.f32 %v2962_v33, %v2331_v34 }
 0x266   : > { %v1861_v46 = vsel %vm1857_vm7, %v5323_v51, %v1856_v19  ;;  %v1871_v63 = vadd.f32 %v1856_v19, %v5301_v20  ;;  %v2169_v51 = vsel %vm1857_vm7, %v5335_v1, %v2165_v7 }
 0x267   : > { %v2319_v2 = vpop.permute.xlu1 %2318  ;;  %v1870_v20 = vadd.f32 %v1861_v46, %v5303_v5  ;;  %v2178_v5 = vadd.f32 %v2169_v51, %v2024_v23  ;;  %v5859_v23 = vld [vmem:[#allocation9_spill] sm:$0xff] }
 0x268   : > { %v2333_v13 = vadd.f32 %v2319_v2, %v2179_v55 }
 0x275   : > { %v2478_v30 = vpop.permute.xlu0 %2477 }
 0x276   : > { %v2483_v50 = vsel %vm2479_vm8, %v5348_v45, %v2478_v30  ;;  %v2493_v39 = vadd.f32 %v2478_v30, %v1871_v63  ;;  %v2323_v45 = vsel %vm1857_vm7, %v5357_v22, %v2319_v2  ;;  %v2817_v30 = vadd.f32 %v2807_v4, %v2650_v8 }
 0x277   : > { %v2492_v19 = vadd.f32 %v2483_v50, %v1870_v20  ;;  %v2332_v44 = vadd.f32 %v2323_v45, %v2178_v5  ;;  %v3122_v22 = vsel %vm2804_vm9, %v5379_v0, %v5392_v60  ;;  %v5486_v5 = vsub.s32 0, %v5859_v23 }
 0x278   : > { %v3132_v0 = vadd.f32 %v3122_v22, %v2971_v58 }
 0x27f   : > { %v2638_v29 = vpop.permute.xlu0 %2637 }
 0x280   : > { %v2642_v15 = vsel %vm2479_vm8, %v5371_v6, %v2638_v29  ;;  %v2652_v38 = vadd.f32 %v2638_v29, %v2493_v39  ;;  %v3304_v29 = vadd.f32 %v5046_v11, %v2817_v30 }
 0x281   : > { %v2651_v3 = vadd.f32 %v2642_v15, %v2492_v19 }
 0x282   : > { %v3309_v17 = vmax.f32 %v3304_v29, 0.0 }
 0x28d   : > { %v2801_v12 = vpop.permute.xlu1 %2800 }
 0x28e   : > { %v2803_v43 = vpop.permute.xlu0 %2802  ;;  %v2808_v31 = vsel %vm2804_vm9, %v2799_v24, %v2801_v12 }
 0x28f   : > { %v2809_v53 = vsel %vm2804_vm9, %v2801_v12, %v2803_v43  ;;  %v2818_v2 = vadd.f32 %v2808_v31, %v2651_v3 }
 0x290   : > { %v2819_v49 = vadd.f32 %v2809_v53, %v2652_v38 }
 0x292   : > { %v3306_v57 = vadd.f32 %v5046_v11, %v2819_v49 }
 0x294   : > { %v3311_v56 = vmax.f32 %v3306_v57, 0.0 }
 0x297   : > { %v2959_v35 = vpop.permute.xlu1 %2958 }
 0x298   : > { %v2973_v18 = vadd.f32 %v2959_v35, %v2333_v13  ;;  %v2963_v6 = vsel %vm2479_vm8, %v5375_v61, %v2959_v35  ;;  %v3305_v35 = vadd.f32 %v5046_v11, %v2818_v2 }
 0x299   : > { %v2972_v10 = vadd.f32 %v2963_v6, %v2332_v44 }
 0x29a   : > { %v3310_v40 = vmax.f32 %v3305_v35, 0.0 }
 0x2a5   : > { %v3117_v9 = vpop.permute.xlu0 %3116 }
 0x2a6   : > { %v3123_v28 = vsel %vm2804_vm9, %v5392_v60, %v3117_v9 }
 0x2a7   : > { %v3133_v32 = vadd.f32 %v3123_v28, %v2972_v10 }
 0x2a9   : > { %v3119_v27 = vpop.permute.xlu1 %3118 }
 0x2aa   : > { %v3124_v1 = vsel %vm2804_vm9, %v3117_v9, %v3119_v27 }
 0x2ab   : > { %v3134_v52 = vadd.f32 %v3124_v1, %v2973_v18 }
 0x2af   : > { %v3278_v7 = vpop.permute.xlu1 %3277 }
 0x2b1   : > { %v3280_v62 = vpop.permute.xlu0 %3279 }
 0x2b2   : > { %v3285_v24 = vsel %vm2804_vm9, %v3278_v7, %v3280_v62 }
 0x2b3   : > { %v3274_v12 = vpop.permute.xlu1 %3273  ;;  %v3295_v61 = vadd.f32 %v3285_v24, %v3134_v52 }
 0x2b4   : > { %v3282_v37 = vsel %vm2804_vm9, %v5319_v42, %v3274_v12 }
 0x2b5   : > { %v3292_v59 = vadd.f32 %v3282_v37, %v5384_v41  ;;  %v3316_v60 = vadd.f32 %v5046_v11, %v3295_v61  ;;  %v3276_v47 = vpop.permute.xlu0 %3275  ;;  %v3308_v41 = vmax.f32 %v3303_v54, 0.0 }
 0x2b6   : > { %v3283_v21 = vsel %vm2804_vm9, %v3274_v12, %v3276_v47  ;;  %v3284_v42 = vsel %vm2804_vm9, %v3276_v47, %v3278_v7 }
 0x2b7   : > { %v3313_v14 = vadd.f32 %v5046_v11, %v3292_v59  ;;  %v3321_v36 = vmax.f32 %v3316_v60, 0.0  ;;  %v3293_v16 = vadd.f32 %v3283_v21, %v3132_v0  ;;  %v3294_v25 = vadd.f32 %v3284_v42, %v3133_v32 }
 0x2b9   : > { %v3318_v26 = vmax.f32 %v3313_v14, 0.0  ;;  %v3314_v46 = vadd.f32 %v5046_v11, %v3293_v16  ;;  %v3315_v63 = vadd.f32 %v5046_v11, %v3294_v25  ;;  %v3326_v43 = vmax.f32 %v3311_v56, %v3321_v36 }
 0x2ba   : > { %v4508_v11 = vmov 1966171168  }
 0x2bb   : > { %v3323_v34 = vmax.f32 %v3308_v41, %v3318_v26  ;;  %v3319_v27 = vmax.f32 %v3314_v46, 0.0  ;;  %v3320_v33 = vmax.f32 %v3315_v63, 0.0  ;;  %v3360_v51 = vunpack.c.l.s4 %v4508_v11 }
 0x2bd   : > { %3337 = vrot.lane.b32.xlu1 %v3323_v34, %s4505_s8  ;;  %v3324_v55 = vmax.f32 %v3309_v17, %v3319_v27  ;;  %v3325_v50 = vmax.f32 %v3310_v40, %v3320_v33  ;;  %v3328_v39 = vpop.permute.xlu1 %3327  ;;  %v3361_v20 = vunpack.c.0.s8 %v3360_v51  ;;  %v3336_v53 = vpop.permute.xlu0 %3335 }
 0x2be   : > { %v3329_v8 = vsel %vm934_vm4, %v3328_v39, %v3326_v43 }
 0x2bf   : > { %3339 = vrot.lane.b32.xlu0 %v3324_v55, %s4505_s8  ;;  %v5477_v13 = vsub.s32 %v3361_v20, %v5859_v23 }
 0x2c1   : > { %3341 = vrot.lane.b32.xlu1 %v3325_v50, %s4505_s8 }
 0x2c3   : > { %3343 = vrot.lane.b32.xlu0 %v3329_v8, %s4505_s8  ;;  %s4509_s8 = smov [#allocation4]  }
 0x2c4   : > { %s4407_s30 = sshll.u32 %s4509_s8, 4  ;;  %s4408_s30 = int_to_ptr.vmem [resolvable:$false] %s4407_s30 }
 0x2c5   : > { %s4409_s7 = scalar_lea.vmem %s4408_s30, 2048  ;;  %p4410_p5 = scmp.lt.s32.totalorder %s5778_s14, %s4408_s30 }
 0x32f   : > { %v3338_v15 = vpop.permute.xlu1 %3337 }
 0x330   : > { %v3345_v38 = vsel %vm1538_vm6, %v3336_v53, %v3338_v15 }
 0x331   : > { %v3353_v9 = vmax.f32 %v5346_v48, %v3345_v38  ;;  %v3340_v4 = vpop.permute.xlu0 %3339 }
 0x332   : > { %v3346_v1 = vsel %vm1538_vm6, %v3338_v15, %v3340_v4 }
 0x333   : > { %v3358_v45 = vcombine.high %v3353_v9, %v3353_v9  ;;  %v3365_v19 = vrot.slane %v3353_v9, %v5477_v13  ;;  %v3342_v7 = vpop.permute.xlu1 %3341  ;;  %v3354_v31 = vmax.f32 %v3323_v34, %v3346_v1 }
 0x334   : > { %v3347_v49 = vsel %vm1538_vm6, %v3340_v4, %v3342_v7 }
 0x335   : > { %v3372_v18 = vrot.slane %v3358_v45, %v5477_v13  ;;  %v3373_v3 = vcombine.high %v3365_v19, %v3365_v19  ;;  %v3381_v6 = vrot.slane %v3365_v19, %v5477_v13  ;;  %v3355_v48 = vmax.f32 %v3324_v55, %v3347_v49  ;;  %v3344_v44 = vpop.permute.xlu0 %3343 }
 0x336   : > { %v3489_v58 = vcombine.high %v3354_v31, %v3354_v31  ;;  %v3496_v30 = vrot.slane %v3354_v31, %v5477_v13  ;;  %v3348_v37 = vsel %vm1538_vm6, %v3342_v7, %v3344_v44 }
 0x337   : > { %v3374_v52 = vcombine.high %v3372_v18, %v3372_v18  ;;  %v5493_v62 = vrot.slane %v3372_v18, %v5477_v13  ;;  %v3395_v22 = vrot.slane %v3373_v3, %v5477_v13  ;;  %3416 = vst.msk [vmem:[%s5496_s20] sm:$0x1] %vm3415_vm10, %v3381_v6  ;;  %v3619_v2 = vcombine.high %v3355_v48, %v3355_v48 }
 0x338   : > { %v3503_v28 = vrot.slane %v3489_v58, %v5477_v13  ;;  %v3504_v24 = vcombine.high %v3496_v30, %v3496_v30  ;;  %v3512_v12 = vrot.slane %v3496_v30, %v5477_v13  ;;  %v3626_v57 = vrot.slane %v3355_v48, %v5477_v13 }
 0x339   : > { %v5504_v10 = vrot.slane %v3374_v52, %v5477_v13  ;;  %3417 = vst.msk [vmem:[%s5496_s20 + $0x8] sm:$0x1] %vm3415_vm10, %v3395_v22  ;;  %3420 = vst.msk [vmem:[%s5496_s20 + $0x20] sm:$0x1] %vm3415_vm10, %v5493_v62  ;;  %v3633_v61 = vrot.slane %v3619_v2, %v5477_v13  ;;  %v3427_v54 = vrot.slane %v3381_v6, %v5486_v5 }
 0x33a   : > { %v3505_v59 = vcombine.high %v3503_v28, %v3503_v28  ;;  %v5515_v0 = vrot.slane %v3503_v28, %v5477_v13  ;;  %v3526_v29 = vrot.slane %v3504_v24, %v5477_v13  ;;  %3546 = vst.msk [vmem:[%s5496_s20 + $0x2] sm:$0x1] %vm3415_vm10, %v3512_v12  ;;  %v3634_v32 = vcombine.high %v3626_v57, %v3626_v57 }
 0x33b   : > { %3421 = vst.msk [vmem:[%s5496_s20 + $0x28] sm:$0x1] %vm3415_vm10, %v5504_v10  ;;  %v3635_v60 = vcombine.high %v3633_v61, %v3633_v61  ;;  %v5524_v47 = vrot.slane %v3626_v57, %v5477_v13  ;;  %v5527_v35 = vrot.slane %v3633_v61, %v5477_v13  ;;  %v3356_v14 = vmax.f32 %v3325_v50, %v3348_v37 }
 0x33c   : > { %3456 = vrot.lane.b32.xlu1 %v3427_v54, %s4504_s29  ;;  %v5531_v21 = vrot.slane %v3505_v59, %v5477_v13  ;;  %3547 = vst.msk [vmem:[%s5496_s20 + $0xa] sm:$0x1] %vm3415_vm10, %v3526_v29  ;;  %3550 = vst.msk [vmem:[%s5496_s20 + $0x22] sm:$0x1] %vm3415_vm10, %v5515_v0  ;;  %v5539_v42 = vrot.slane %v3634_v32, %v5477_v13  ;;  %v3431_v56 = vrot.slane %v3395_v22, %v5486_v5 }
 0x33d   : > { %v5543_v36 = vrot.slane %v3635_v60, %v5477_v13  ;;  %3676 = vst.msk [vmem:[%s5496_s20 + $0x4] sm:$0x1] %vm3415_vm10, %v5524_v47  ;;  %3680 = vst.msk [vmem:[%s5496_s20 + $0x24] sm:$0x1] %vm3415_vm10, %v5527_v35  ;;  %v3749_v16 = vcombine.high %v3356_v14, %v3356_v14  ;;  %v3756_v25 = vrot.slane %v3356_v14, %v5477_v13 }
 0x33e   : > { %v3557_v41 = vrot.slane %v3512_v12, %v5486_v5  ;;  %3551 = vst.msk [vmem:[%s5496_s20 + $0x2a] sm:$0x1] %vm3415_vm10, %v5531_v21  ;;  %3677 = vst.msk [vmem:[%s5496_s20 + $0xc] sm:$0x1] %vm3415_vm10, %v5539_v42  ;;  %3458 = vrot.lane.b32.xlu0 %v3431_v56, %s4504_s29  ;;  %v3403_v26 = vcombine.high %v3381_v6, %v3381_v6  ;;  %v3405_v46 = vcombine.high %v3395_v22, %v3395_v22 }
 0x33f   : > { %3681 = vst.msk [vmem:[%s5496_s20 + $0x2c] sm:$0x1] %vm3415_vm10, %v5543_v36  ;;  %v3763_v63 = vrot.slane %v3749_v16, %v5477_v13  ;;  %v3764_v43 = vcombine.high %v3756_v25, %v3756_v25  ;;  %v5565_v34 = vrot.slane %v3756_v25, %v5477_v13  ;;  %v3534_v17 = vcombine.high %v3512_v12, %v3512_v12 }
 0x340   : > { %3586 = vrot.lane.b32.xlu1 %v3557_v41, %s4504_s29  ;;  %v3561_v40 = vrot.slane %v3526_v29, %v5486_v5  ;;  %3418 = vst.msk [vmem:[%s5496_s20 + $0x10] sm:$0x1] %vm3415_vm10, %v3403_v26  ;;  %3419 = vst.msk [vmem:[%s5496_s20 + $0x18] sm:$0x1] %vm3415_vm10, %v3405_v46  ;;  %v3536_v27 = vcombine.high %v3526_v29, %v3526_v29  ;;  %v3435_v39 = vrot.slane %v3403_v26, %v5486_v5 }
 0x341   : > { %v3765_v33 = vcombine.high %v3763_v63, %v3763_v63  ;;  %v5574_v55 = vrot.slane %v3763_v63, %v5477_v13  ;;  %v5577_v50 = vrot.slane %v3764_v43, %v5477_v13  ;;  %3806 = vst.msk [vmem:[%s5496_s20 + $0x6] sm:$0x1] %vm3415_vm10, %v5565_v34  ;;  %3548 = vst.msk [vmem:[%s5496_s20 + $0x12] sm:$0x1] %vm3415_vm10, %v3534_v17 }
 0x342   : > { %3588 = vrot.lane.b32.xlu0 %v3561_v40, %s4504_s29  ;;  %3549 = vst.msk [vmem:[%s5496_s20 + $0x1a] sm:$0x1] %vm3415_vm10, %v3536_v27  ;;  %v3404_v8 = vcombine.high %v5493_v62, %v5493_v62  ;;  %v3406_v11 = vcombine.high %v5504_v10, %v5504_v10  ;;  %v3535_v20 = vcombine.high %v5515_v0, %v5515_v0 }
 0x343   : > { %v5593_v51 = vrot.slane %v3765_v33, %v5477_v13  ;;  %3807 = vst.msk [vmem:[%s5496_s20 + $0xe] sm:$0x1] %vm3415_vm10, %v5577_v50  ;;  %3810 = vst.msk [vmem:[%s5496_s20 + $0x26] sm:$0x1] %vm3415_vm10, %v5574_v55  ;;  %v3537_v53 = vcombine.high %v5531_v21, %v5531_v21  ;;  %v3439_v23 = vrot.slane %v3405_v46, %v5486_v5 }
 0x344   : > { %3460 = vrot.lane.b32.xlu1 %v3435_v39, %s4504_s29  ;;  %3422 = vst.msk [vmem:[%s5496_s20 + $0x30] sm:$0x1] %vm3415_vm10, %v3404_v8  ;;  %3423 = vst.msk [vmem:[%s5496_s20 + $0x38] sm:$0x1] %vm3415_vm10, %v3406_v11  ;;  %v3664_v13 = vcombine.high %v5524_v47, %v5524_v47  ;;  %v3443_v15 = vrot.slane %v5493_v62, %v5486_v5  ;;  %v3666_v38 = vcombine.high %v5539_v42, %v5539_v42 }
 0x345   : > { %3811 = vst.msk [vmem:[%s5496_s20 + $0x2e] sm:$0x1] %vm3415_vm10, %v5593_v51  ;;  %3552 = vst.msk [vmem:[%s5496_s20 + $0x32] sm:$0x1] %vm3415_vm10, %v3535_v20  ;;  %v3665_v9 = vcombine.high %v5527_v35, %v5527_v35  ;;  %v3667_v4 = vcombine.high %v5543_v36, %v5543_v36  ;;  %v3794_v45 = vcombine.high %v5565_v34, %v5565_v34 }
 0x346   : > { %3553 = vst.msk [vmem:[%s5496_s20 + $0x3a] sm:$0x1] %vm3415_vm10, %v3537_v53  ;;  %3462 = vrot.lane.b32.xlu0 %v3439_v23, %s4504_s29  ;;  %3678 = vst.msk [vmem:[%s5496_s20 + $0x14] sm:$0x1] %vm3415_vm10, %v3664_v13  ;;  %v3447_v19 = vrot.slane %v5504_v10, %v5486_v5  ;;  %v3796_v1 = vcombine.high %v5577_v50, %v5577_v50  ;;  %v3795_v7 = vcombine.high %v5574_v55, %v5574_v55 }
 0x347   : > { %3679 = vst.msk [vmem:[%s5496_s20 + $0x1c] sm:$0x1] %vm3415_vm10, %v3666_v38  ;;  %v3565_v31 = vrot.slane %v3534_v17, %v5486_v5  ;;  %3682 = vst.msk [vmem:[%s5496_s20 + $0x34] sm:$0x1] %vm3415_vm10, %v3665_v9  ;;  %v3797_v49 = vcombine.high %v5593_v51, %v5593_v51  ;;  %v3569_v3 = vrot.slane %v3536_v27, %v5486_v5 }
 0x348   : > { %3464 = vrot.lane.b32.xlu1 %v3443_v15, %s4504_s29  ;;  %3683 = vst.msk [vmem:[%s5496_s20 + $0x3c] sm:$0x1] %vm3415_vm10, %v3667_v4  ;;  %3808 = vst.msk [vmem:[%s5496_s20 + $0x16] sm:$0x1] %vm3415_vm10, %v3794_v45  ;;  %v3573_v6 = vrot.slane %v5515_v0, %v5486_v5  ;;  %v3577_v48 = vrot.slane %v5531_v21, %v5486_v5  ;;  %v3451_v58 = vrot.slane %v3404_v8, %v5486_v5 }
 0x349   : > { %3809 = vst.msk [vmem:[%s5496_s20 + $0x1e] sm:$0x1] %vm3415_vm10, %v3796_v1  ;;  %3812 = vst.msk [vmem:[%s5496_s20 + $0x36] sm:$0x1] %vm3415_vm10, %v3795_v7  ;;  %v3845_v18 = vrot.slane %v3797_v49, %v5486_v5  ;;  %v3455_v30 = vrot.slane %v3406_v11, %v5486_v5  ;;  %v3581_v44 = vrot.slane %v3535_v20, %v5486_v5 }
 0x34a   : > { %3466 = vrot.lane.b32.xlu0 %v3447_v19, %s4504_s29  ;;  %3813 = vst.msk [vmem:[%s5496_s20 + $0x3e] sm:$0x1] %vm3415_vm10, %v3797_v49  ;;  %v3585_v52 = vrot.slane %v3537_v53, %v5486_v5  ;;  %v3687_v62 = vrot.slane %v5524_v47, %v5486_v5  ;;  %v3691_v22 = vrot.slane %v5539_v42, %v5486_v5 }
 0x34b   : > { %v3695_v2 = vrot.slane %v3664_v13, %v5486_v5  ;;  %v3699_v28 = vrot.slane %v3666_v38, %v5486_v5  ;;  %v3703_v24 = vrot.slane %v5527_v35, %v5486_v5  ;;  %v3707_v12 = vrot.slane %v5543_v36, %v5486_v5 }
 0x34c   : > { %3590 = vrot.lane.b32.xlu1 %v3565_v31, %s4504_s29  ;;  %v3817_v57 = vrot.slane %v5565_v34, %v5486_v5  ;;  %v3821_v10 = vrot.slane %v5577_v50, %v5486_v5  ;;  %v3711_v61 = vrot.slane %v3665_v9, %v5486_v5  ;;  %v3715_v37 = vrot.slane %v3667_v4, %v5486_v5 }
 0x34d   : > { %v3825_v54 = vrot.slane %v3794_v45, %v5486_v5  ;;  %v3829_v59 = vrot.slane %v3796_v1, %v5486_v5  ;;  %v3833_v0 = vrot.slane %v5574_v55, %v5486_v5  ;;  %v3837_v29 = vrot.slane %v5593_v51, %v5486_v5 }
 0x34e   : > { %3592 = vrot.lane.b32.xlu0 %v3569_v3, %s4504_s29  ;;  %v3841_v32 = vrot.slane %v3795_v7, %v5486_v5 }
 0x350   : > { %3594 = vrot.lane.b32.xlu1 %v3573_v6, %s4504_s29 }
 0x352   : > { %3596 = vrot.lane.b32.xlu0 %v3577_v48, %s4504_s29 }
 0x354   : > { %3468 = vrot.lane.b32.xlu1 %v3451_v58, %s4504_s29 }
 0x356   : > { %3470 = vrot.lane.b32.xlu0 %v3455_v30, %s4504_s29 }
 0x358   : > { %3598 = vrot.lane.b32.xlu1 %v3581_v44, %s4504_s29 }
 0x35a   : > { %3600 = vrot.lane.b32.xlu0 %v3585_v52, %s4504_s29 }
 0x35c   : > { %3716 = vrot.lane.b32.xlu1 %v3687_v62, %s4504_s29 }
 0x35e   : > { %3718 = vrot.lane.b32.xlu0 %v3691_v22, %s4504_s29 }
 0x360   : > { %3720 = vrot.lane.b32.xlu1 %v3695_v2, %s4504_s29 }
 0x362   : > { %3722 = vrot.lane.b32.xlu0 %v3699_v28, %s4504_s29 }
 0x364   : > { %3724 = vrot.lane.b32.xlu1 %v3703_v24, %s4504_s29 }
 0x366   : > { %3726 = vrot.lane.b32.xlu0 %v3707_v12, %s4504_s29 }
 0x368   : > { %3846 = vrot.lane.b32.xlu1 %v3817_v57, %s4504_s29 }
 0x36a   : > { %3848 = vrot.lane.b32.xlu0 %v3821_v10, %s4504_s29 }
 0x36c   : > { %3728 = vrot.lane.b32.xlu1 %v3711_v61, %s4504_s29 }
 0x36e   : > { %3730 = vrot.lane.b32.xlu0 %v3715_v37, %s4504_s29 }
 0x370   : > { %3850 = vrot.lane.b32.xlu1 %v3825_v54, %s4504_s29 }
 0x372   : > { %3852 = vrot.lane.b32.xlu0 %v3829_v59, %s4504_s29 }
 0x374   : > { %3854 = vrot.lane.b32.xlu1 %v3833_v0, %s4504_s29 }
 0x376   : > { %3856 = vrot.lane.b32.xlu0 %v3837_v29, %s4504_s29 }
 0x378   : > { %3858 = vrot.lane.b32.xlu1 %v3841_v32, %s4504_s29 }
 0x37a   : > { %3860 = vrot.lane.b32.xlu0 %v3845_v18, %s4504_s29  ;;  %s4403_s29 = scalar_lea.vmem %s5778_s14, 1024 }
 0x37b   : > { %p4404_p1 = scmp.ne.s32.totalorder %s5778_s14, %s4403_s29  ;;  %p4411_p6 = scmp.lt.s32.totalorder %s4409_s7, %s4403_s29 }
 0x37d   : > { %p4405_p2 = pnand %p4404_p1, %p4599_p3  ;;  %p4412_p7 = por %p4411_p6, %p4410_p5 }
 0x37f   : > { %p4406_p4 = pneg %p4405_p2 }
 0x381   : > { %p4413_p9 = pnand %p4412_p7, %p4406_p4 }
 0x3ae   : > { %v3457_v60 = vpop.permute.xlu1 %3456 }
 0x3af   : > { %3480 = vst.msk [vmem:[%s5496_s20 + $0x1] sm:$0x1] %vm3415_vm10, %v3457_v60 }
 0x3b0   : > { %v3459_v47 = vpop.permute.xlu0 %3458 }
 0x3b1   : > { %3481 = vst.msk [vmem:[%s5496_s20 + $0x9] sm:$0x1] %vm3415_vm10, %v3459_v47 }
 0x3b2   : > { %v3587_v35 = vpop.permute.xlu1 %3586 }
 0x3b3   : > { %3610 = vst.msk [vmem:[%s5496_s20 + $0x3] sm:$0x1] %vm3415_vm10, %v3587_v35 }
 0x3b4   : > { %v3589_v5 = vpop.permute.xlu0 %3588 }
 0x3b5   : > { %3611 = vst.msk [vmem:[%s5496_s20 + $0xb] sm:$0x1] %vm3415_vm10, %v3589_v5 }
 0x3b6   : > { %v3461_v14 = vpop.permute.xlu1 %3460 }
 0x3b7   : > { %3482 = vst.msk [vmem:[%s5496_s20 + $0x11] sm:$0x1] %vm3415_vm10, %v3461_v14 }
 0x3b8   : > { %v3463_v21 = vpop.permute.xlu0 %3462 }
 0x3b9   : > { %3483 = vst.msk [vmem:[%s5496_s20 + $0x19] sm:$0x1] %vm3415_vm10, %v3463_v21 }
 0x3ba   : > { %v3465_v42 = vpop.permute.xlu1 %3464 }
 0x3bb   : > { %3484 = vst.msk [vmem:[%s5496_s20 + $0x21] sm:$0x1] %vm3415_vm10, %v3465_v42 }
 0x3bc   : > { %v3467_v56 = vpop.permute.xlu0 %3466 }
 0x3bd   : > { %3485 = vst.msk [vmem:[%s5496_s20 + $0x29] sm:$0x1] %vm3415_vm10, %v3467_v56 }
 0x3be   : > { %v3591_v36 = vpop.permute.xlu1 %3590 }
 0x3bf   : > { %3612 = vst.msk [vmem:[%s5496_s20 + $0x13] sm:$0x1] %vm3415_vm10, %v3591_v36 }
 0x3c0   : > { %v3593_v16 = vpop.permute.xlu0 %3592 }
 0x3c1   : > { %3613 = vst.msk [vmem:[%s5496_s20 + $0x1b] sm:$0x1] %vm3415_vm10, %v3593_v16 }
 0x3c2   : > { %v3595_v25 = vpop.permute.xlu1 %3594 }
 0x3c3   : > { %3614 = vst.msk [vmem:[%s5496_s20 + $0x23] sm:$0x1] %vm3415_vm10, %v3595_v25 }
 0x3c4   : > { %v3597_v41 = vpop.permute.xlu0 %3596 }
 0x3c5   : > { %3615 = vst.msk [vmem:[%s5496_s20 + $0x2b] sm:$0x1] %vm3415_vm10, %v3597_v41 }
 0x3c6   : > { %v3469_v26 = vpop.permute.xlu1 %3468 }
 0x3c7   : > { %3486 = vst.msk [vmem:[%s5496_s20 + $0x31] sm:$0x1] %vm3415_vm10, %v3469_v26 }
 0x3c8   : > { %v3471_v46 = vpop.permute.xlu0 %3470 }
 0x3c9   : > { %3487 = vst.msk [vmem:[%s5496_s20 + $0x39] sm:$0x1] %vm3415_vm10, %v3471_v46 }
 0x3ca   : > { %v3599_v63 = vpop.permute.xlu1 %3598 }
 0x3cb   : > { %3616 = vst.msk [vmem:[%s5496_s20 + $0x33] sm:$0x1] %vm3415_vm10, %v3599_v63 }
 0x3cc   : > { %v3601_v43 = vpop.permute.xlu0 %3600 }
 0x3cd   : > { %3617 = vst.msk [vmem:[%s5496_s20 + $0x3b] sm:$0x1] %vm3415_vm10, %v3601_v43 }
 0x3ce   : > { %v3717_v34 = vpop.permute.xlu1 %3716 }
 0x3cf   : > { %3740 = vst.msk [vmem:[%s5496_s20 + $0x5] sm:$0x1] %vm3415_vm10, %v3717_v34 }
 0x3d0   : > { %v3719_v17 = vpop.permute.xlu0 %3718 }
 0x3d1   : > { %3741 = vst.msk [vmem:[%s5496_s20 + $0xd] sm:$0x1] %vm3415_vm10, %v3719_v17 }
 0x3d2   : > { %v3721_v40 = vpop.permute.xlu1 %3720 }
 0x3d3   : > { %3742 = vst.msk [vmem:[%s5496_s20 + $0x15] sm:$0x1] %vm3415_vm10, %v3721_v40 }
 0x3d4   : > { %v3723_v27 = vpop.permute.xlu0 %3722 }
 0x3d5   : > { %3743 = vst.msk [vmem:[%s5496_s20 + $0x1d] sm:$0x1] %vm3415_vm10, %v3723_v27 }
 0x3d6   : > { %v3725_v33 = vpop.permute.xlu1 %3724 }
 0x3d7   : > { %3744 = vst.msk [vmem:[%s5496_s20 + $0x25] sm:$0x1] %vm3415_vm10, %v3725_v33 }
 0x3d8   : > { %v3727_v55 = vpop.permute.xlu0 %3726 }
 0x3d9   : > { %3745 = vst.msk [vmem:[%s5496_s20 + $0x2d] sm:$0x1] %vm3415_vm10, %v3727_v55 }
 0x3da   : > { %v3847_v50 = vpop.permute.xlu1 %3846 }
 0x3db   : > { %3870 = vst.msk [vmem:[%s5496_s20 + $0x7] sm:$0x1] %vm3415_vm10, %v3847_v50 }
 0x3dc   : > { %v3849_v39 = vpop.permute.xlu0 %3848 }
 0x3dd   : > { %3871 = vst.msk [vmem:[%s5496_s20 + $0xf] sm:$0x1] %vm3415_vm10, %v3849_v39 }
 0x3de   : > { %v3729_v8 = vpop.permute.xlu1 %3728 }
 0x3df   : > { %3746 = vst.msk [vmem:[%s5496_s20 + $0x35] sm:$0x1] %vm3415_vm10, %v3729_v8 }
 0x3e0   : > { %v3731_v11 = vpop.permute.xlu0 %3730 }
 0x3e1   : > { %3747 = vst.msk [vmem:[%s5496_s20 + $0x3d] sm:$0x1] %vm3415_vm10, %v3731_v11 }
 0x3e2   : > { %v3851_v51 = vpop.permute.xlu1 %3850 }
 0x3e3   : > { %3872 = vst.msk [vmem:[%s5496_s20 + $0x17] sm:$0x1] %vm3415_vm10, %v3851_v51 }
 0x3e4   : > { %v3853_v20 = vpop.permute.xlu0 %3852 }
 0x3e5   : > { %3873 = vst.msk [vmem:[%s5496_s20 + $0x1f] sm:$0x1] %vm3415_vm10, %v3853_v20 }
 0x3e6   : > { %v3855_v53 = vpop.permute.xlu1 %3854 }
 0x3e7   : > { %3874 = vst.msk [vmem:[%s5496_s20 + $0x27] sm:$0x1] %vm3415_vm10, %v3855_v53 }
 0x3e8   : > { %v3857_v23 = vpop.permute.xlu0 %3856 }
 0x3e9   : > { %3875 = vst.msk [vmem:[%s5496_s20 + $0x2f] sm:$0x1] %vm3415_vm10, %v3857_v23 }
 0x3ea   : > { %v3859_v13 = vpop.permute.xlu1 %3858 }
 0x3eb   : > { %3876 = vst.msk [vmem:[%s5496_s20 + $0x37] sm:$0x1] %vm3415_vm10, %v3859_v13 }
 0x3ec   : > { %v3861_v15 = vpop.permute.xlu0 %3860 }
 0x3ed   : > { %3877 = vst.msk [vmem:[%s5496_s20 + $0x3f] sm:$0x1] %vm3415_vm10, %v3861_v15 }
 0x3ee   : > { %4416 = shalt.err (!%p4413_p9)
}
 0x3ef   : > { %s4417_s9 = scalar_lea.hbm %s5785_s17, 1024  ;;  %s4421_s12 = scalar_lea.hbm %s5849_s6, 4096 }
 0x3f0   : > { %p4418_p10 = scmp.ne.s32.totalorder %s5785_s17, %s4417_s9  ;;  %p4422_p13 = scmp.lt.u32.totalorder %s5785_s17, %s5849_s6 }
 0x3f1   : > { %p4423_p0 = scmp.lt.u32.totalorder %s4421_s12, %s4417_s9  ;;  %p4425_p2 = scmp.lt.u32.totalorder %s4417_s9, %s5785_s17 }
 0x3f2   : > { %p4419_p11 = pnand %p4418_p10, %p4599_p3 }
 0x3f3   : > { %p4424_p1 = por %p4423_p0, %p4422_p13 }
 0x3f4   : > { %p4420_p12 = pneg %p4419_p11 }
 0x3f5   : > { %p4426_p4 = por %p4425_p2, %p4424_p1 }
 0x3f7   : > { %p4427_p5 = pnand %p4426_p4, %p4420_p12 }
 0x3f9   : > { %4430 = shalt.err (!%p4427_p5)
}
 0x3fa   : > { %s4510_s24 = smov 128   ;;  %s4511_s25 = smov 256  }
 0x3fb   : > { %s4512_s29 = smov 8  }
 0x3fc   : > { %4316 = dma.vmem_to_hbm [thread:$0]  (%p4599_p3), %s5778_s14, 1024, %s5785_s17, %s5791_s18, %s4510_s24, %s4511_s25, %s4512_s29  }
 0x3fd PF: > { %p4322_p6 = scmp.ge.s32.totalorder %s4497_s28, 2  ;;  %s3908_s8 = sand.u32 1, %s4469_s21  }
 0x3fe   : > { %s3909_s30 = scalar_lea.sflag [#allocation5], %s3908_s8 }
 0x3ff   : > { %p4319_p7 = pnand %p4322_p6, %p4608_p8 }
 0x401   : > { %4464 = dma.done.wait (!%p4319_p7), %s3909_s30, 1024  }
 0x402   : > { %4466 = vsyncadd (!%p4319_p7), %s3909_s30, 4294966272  ;;  %s19_s28 = sadd.s32 1, %s4497_s28   ;;  %s5860_s10 = sld [smem:[#allocation7_spill]] }
 0x403   : > { %p16_p9 = scmp.ge.s32.totalorder %s19_s28, 6   ;;  %s5861_s14 = sld [smem:[#allocation8_spill]] }
 0x404   : > { %s5862_s21 = smov %s4473_s22  ;;  %s5863_s22 = smov %s4477_s23 }
 0x405   : > { %s5864_s23 = smov %s4617_s15  ;;  %s5865_s24 = smov %s4489_s26 }
 0x406   : > { %s5866_s25 = smov %s4493_s27  ;;  %18 = sbr.rel (!%p16_p9) target bundleno = 5 (0x5), region = 96 }
 0x408   : > { %s5867_s26 = smov %s5860_s10 }
 0x409   : > { %s5868_s27 = smov %s5861_s14 }
 0x40d   :  { %3914 = vsyncpa [#allocation5], 1 }
 0x40e   :  { %3916 = vsyncpa [#allocation5 + $0x1], 1 }

</bundles_post_ra>
